<compile_context>
chip_gen: v5e
topology: v5e:2x2
jax: 0.10.0
libtpu: 0.0.40
codegen_flags: <defaults>
</compile_context>

<pallas_src>
import math
import jax
import jax.numpy as jnp
from jax.experimental import pallas as pl
from jax.experimental.pallas import tpu as pltpu


def _round_up(v, m):
    return (v + m - 1) // m * m


def _predictor_kernel(x_ref, w_ref, b_ref, o_ref):
    # x_ref: (TN, HW, C)  bf16   -- one tile of ROIs, channels-last
    # w_ref: (C, NCP)     f32    -- weight.T pre-scaled by 1/(H*W), zero-padded cols
    # b_ref: (1, NCP)     f32    -- bias, zero-padded cols
    # o_ref: (TN, NCP)    f32
    x = x_ref[...].astype(jnp.float32)           # upcast before reduce (v5e VPU has no bf16)
    pooled = jnp.sum(x, axis=1)                  # sublane-direction reduce -> (TN, C), f32
    logits = jnp.dot(pooled, w_ref[...],
                     preferred_element_type=jnp.float32)  # MXU (TN,C)x(C,NCP)
    o_ref[...] = logits + b_ref[...]             # bias add (broadcast over TN)


def fast_rcnn_predictor(x_nchw, weight, bias, *, tn_max=256):
    """x_nchw: (N, C, H, W); weight: (num_classes, C) [PyTorch layout]; bias: (num_classes,)."""
    n, c, h, w = x_nchw.shape
    hw = h * w
    num_classes = weight.shape[0]

    # Lane-dense output: pad class dim to a multiple of 128.
    ncp = _round_up(num_classes, 128)

    # Tile size over N: multiple of 8, capped so a double-buffered bf16 x tile stays small.
    tn = min(tn_max, _round_up(n, 8))
    while tn > 8 and 2 * tn * hw * c * 2 > (12 << 20):
        tn //= 2
    tn = max(8, _round_up(tn, 8))
    n_pad = _round_up(n, tn)

    # Channels-last, bf16 transfer (kernel is HBM-bandwidth-bound on x).
    x_nlc = jnp.transpose(x_nchw, (0, 2, 3, 1)).reshape(n, hw, c).astype(jnp.bfloat16)
    if n_pad != n:
        x_nlc = jnp.pad(x_nlc, ((0, n_pad - n), (0, 0), (0, 0)))

    # Fold 1/(H*W) into the (pre-transposed) weight; zero-pad class columns.
    w_t = jnp.zeros((c, ncp), jnp.float32).at[:, :num_classes].set(
        jnp.transpose(weight).astype(jnp.float32) / float(hw))
    b2 = jnp.zeros((1, ncp), jnp.float32).at[:, :num_classes].set(
        bias.astype(jnp.float32))

    # VMEM budget: double-buffered x & out tiles + resident weight/bias (+ headroom).
    x_tile_bytes = tn * hw * c * 2
    out_tile_bytes = tn * ncp * 4
    const_bytes = c * ncp * 4 + ncp * 4
    vmem_limit = min(max(2 * x_tile_bytes + 2 * out_tile_bytes + 2 * const_bytes
                         + (4 << 20), 16 << 20), 48 << 20)

    cost = pl.CostEstimate(
        flops=2 * n_pad * c * ncp + n_pad * c * hw,
        transcendentals=0,
        bytes_accessed=n_pad * hw * c * 2 + c * ncp * 4 + ncp * 4 + n_pad * ncp * 4,
    )

    out = pl.pallas_call(
        _predictor_kernel,
        out_shape=jax.ShapeDtypeStruct((n_pad, ncp), jnp.float32),
        grid_spec=pl.GridSpec(
            grid=(n_pad // tn,),
            in_specs=[
                pl.BlockSpec((tn, hw, c), lambda i: (i, 0, 0)),   # x tile over N
                pl.BlockSpec((c, ncp), lambda i: (0, 0)),          # weight: resident
                pl.BlockSpec((1, ncp), lambda i: (0, 0)),          # bias: resident
            ],
            out_specs=pl.BlockSpec((tn, ncp), lambda i: (i, 0)),
        ),
        compiler_params=pltpu.CompilerParams(
            dimension_semantics=("parallel",),
            vmem_limit_bytes=vmem_limit,
        ),
        cost_estimate=cost,
    )(x_nlc, w_t, b2)

    return out[:n, :num_classes]


def init_params(key, in_channels, num_classes, use_class_balance_loss=True):
    """Deterministic init mimicking make_fc (kaiming_uniform a=1) + bias rule."""
    wkey, _ = jax.random.split(key)
    # kaiming_uniform with a=1: bound = sqrt(6 / ((1 + a^2) * fan_in)) = sqrt(3 / fan_in)
    bound = math.sqrt(3.0 / in_channels)
    weight = jax.random.uniform(wkey, (num_classes, in_channels),
                                minval=-bound, maxval=bound, dtype=jnp.float32)
    if use_class_balance_loss:
        bias_value = -math.log(num_classes - 1)
    else:
        bias_value = 0.0
    bias = jnp.full((num_classes,), bias_value, dtype=jnp.float32)
    return weight, bias


if __name__ == "__main__":
    key = jax.random.PRNGKey(0)
    xkey, pkey = jax.random.split(key)

    N, C, H, W = 2, 4, 16, 16         # small ROI feature map (NCHW)
    NUM_CLASSES = 8

    x = jax.random.normal(xkey, (N, C, H, W), dtype=jnp.float32)
    weight, bias = init_params(pkey, C, NUM_CLASSES)

    logits = fast_rcnn_predictor(x, weight, bias)
    jax.block_until_ready(logits)
    assert logits.shape == (N, NUM_CLASSES)

    # Strict check against a reference that matches the kernel's bf16 x transfer.
    x_bf = x.astype(jnp.bfloat16).astype(jnp.float32)
    ref_bf = jnp.mean(x_bf, axis=(2, 3)) @ weight.T + bias
    assert jnp.allclose(logits, ref_bf, atol=1e-3, rtol=1e-3)

    # Loose check against the pure-f32 PyTorch semantics (avgpool -> flatten -> linear).
    ref_f32 = jnp.mean(x, axis=(2, 3)) @ weight.T + bias
    assert jnp.allclose(logits, ref_f32, atol=2e-2, rtol=2e-2)

    print("KERNEL_OK")
</pallas_src>

<mosaic_0001>
module attributes {stable_mosaic.version = 11 : i64} {
  func.func @_predictor_kernel(%arg0: i32, %arg1: memref<8x256x4xbf16, #tpu.memory_space<vmem>>, %arg2: memref<4x128xf32, #tpu.memory_space<vmem>>, %arg3: memref<1x128xf32, #tpu.memory_space<vmem>>, %arg4: memref<8x128xf32, #tpu.memory_space<vmem>>) attributes {dimension_semantics = [#tpu.dimension_semantics<parallel>], iteration_bounds = array<i64: 1>, scalar_prefetch = 0 : i64, scratch_operands = 0 : i64, tpu.core_type = #tpu.core_type<tc>, window_params = [{transform_indices = @transform_0, window_bounds = array<i64: 8, 256, 4>}, {pipeline_mode = #tpu.pipeline_mode<synchronous>, transform_indices = @transform_1, window_bounds = array<i64: 4, 128>}, {pipeline_mode = #tpu.pipeline_mode<synchronous>, transform_indices = @transform_2, window_bounds = array<i64: 1, 128>}, {transform_indices = @transform_3, window_bounds = array<i64: 8, 128>}]} {
    %c0 = arith.constant 0 : index
    %c0_0 = arith.constant 0 : index
    %c0_1 = arith.constant 0 : index
    %0 = vector.load %arg1[%c0, %c0_0, %c0_1] : memref<8x256x4xbf16, #tpu.memory_space<vmem>>, vector<8x256x4xbf16>
    %1 = arith.extf %0 : vector<8x256x4xbf16> to vector<8x256x4xf32>
    %cst = arith.constant dense<0.000000e+00> : vector<8x4xf32>
    %2 = vector.multi_reduction <add>, %1, %cst [1] : vector<8x256x4xf32> to vector<8x4xf32>
    %c0_2 = arith.constant 0 : index
    %c0_3 = arith.constant 0 : index
    %3 = vector.load %arg2[%c0_2, %c0_3] : memref<4x128xf32, #tpu.memory_space<vmem>>, vector<4x128xf32>
    %cst_4 = arith.constant dense<0.000000e+00> : vector<8x128xf32>
    %4 = tpu.matmul %2, %3, %cst_4 {dimension_numbers = #tpu.dot_dimension_numbers<[1], [0], [0], [1], [0, 0, 1, 1], [], []>} : vector<8x4xf32>, vector<4x128xf32>, vector<8x128xf32> -> vector<8x128xf32>
    %c0_5 = arith.constant 0 : index
    %c0_6 = arith.constant 0 : index
    %5 = vector.load %arg3[%c0_5, %c0_6] : memref<1x128xf32, #tpu.memory_space<vmem>>, vector<1x128xf32>
    %6 = vector.broadcast %5 : vector<1x128xf32> to vector<8x128xf32>
    %7 = arith.addf %4, %6 : vector<8x128xf32>
    %c0_7 = arith.constant 0 : index
    %c0_8 = arith.constant 0 : index
    %8 = vector.load %arg4[%c0_7, %c0_8] : memref<8x128xf32, #tpu.memory_space<vmem>>, vector<8x128xf32>
    tpu.vector_store %arg4[%c0_7, %c0_8], %7 {strides = array<i32>} : memref<8x128xf32, #tpu.memory_space<vmem>>, vector<8x128xf32>,
    return
  }
  func.func @transform_0(%arg0: i32) -> (i32, i32, i32) {
    %c0_i32 = arith.constant 0 : i32
    %c0_i32_0 = arith.constant 0 : i32
    %c0_i32_1 = arith.constant 0 : i32
    return %arg0, %c0_i32, %c0_i32_0 : i32, i32, i32
  }
  func.func @transform_1(%arg0: i32) -> (i32, i32) {
    %c0_i32 = arith.constant 0 : i32
    %c0_i32_0 = arith.constant 0 : i32
    %c0_i32_1 = arith.constant 0 : i32
    return %c0_i32, %c0_i32_0 : i32, i32
  }
  func.func @transform_2(%arg0: i32) -> (i32, i32) {
    %c0_i32 = arith.constant 0 : i32
    %c0_i32_0 = arith.constant 0 : i32
    %c0_i32_1 = arith.constant 0 : i32
    return %c0_i32, %c0_i32_0 : i32, i32
  }
  func.func @transform_3(%arg0: i32) -> (i32, i32) {
    %c0_i32 = arith.constant 0 : i32
    %c0_i32_0 = arith.constant 0 : i32
    return %arg0, %c0_i32 : i32, i32
  }
}

</mosaic_0001>

<bundles_post_ra>
// kernel: tpu_custom_call.1
= control target key start
LH: loop header
LB: loop body
LE: loop exit
PB: predicated region body
PF: predicated region fallthrough
CT: control target
= control target key end

     0   :  { %8 = vsyncpa [#allocation3], 0  ;;  %vm527_vm0 = vcmask 31744   ;;  %vm1109_vm1 = vcmask 1043456   ;;  %vm1093_vm2 = vcmask 1041409   ;;  %vm1095_vm3 = vcmask 1042434   ;;  %s3635_s0 = inlined_call_operand.vmem [shape: bf16[8,256,4], index: 0, kind: input, shape index: {}]   ;;  %s3636_s1 = inlined_call_operand.vmem [shape: f32[4,128], index: 1, kind: input, shape index: {}]   ;;  %s3637_s2 = inlined_call_operand.vmem [shape: f32[1,128], index: 2, kind: input, shape index: {}]   ;;  %s3638_s3 = inlined_call_operand.hbm [shape: f32[8,128], index: 3, kind: output, shape index: {}]  }
   0x1   :  { %v1843_v0 = vld [vmem:[%s3635_s0] sm:$0xff]   ;;  %v1848_v1 = vld [vmem:[%s3635_s0 + $0x8] sm:$0xff]   ;;  %v1853_v2 = vld [vmem:[%s3635_s0 + $0x10] sm:$0xff]   ;;  %vm1097_vm4 = vcmask 1043459   ;;  %vm1099_vm5 = vcmask 1044484   ;;  %vm1101_vm6 = vcmask 1045509  }
   0x2   :  { %v1858_v3 = vld [vmem:[%s3635_s0 + $0x18] sm:$0xff]   ;;  %v1863_v4 = vld [vmem:[%s3635_s0 + $0x20] sm:$0xff]   ;;  %v1868_v5 = vld [vmem:[%s3635_s0 + $0x28] sm:$0xff]   ;;  %vm1103_vm7 = vcmask 1046534   ;;  %vm1105_vm8 = vcmask 1047559   ;;  %s1819_s27 = smov [#allocation2]  }
   0x3   :  { %v1877_v10 = vld [vmem:[%s3635_s0 + $0x30] sm:$0xff]   ;;  %v1882_v11 = vld [vmem:[%s3635_s0 + $0x38] sm:$0xff]   ;;  %v1891_v16 = vld [vmem:[%s3635_s0 + $0x40] sm:$0xff]   ;;  %s1139_s28 = sshll.u32 %s1819_s27, 4  ;;  %s1141_s4 = sshll.u32 %s3638_s3, 4  ;;  %s1140_s28 = int_to_ptr.vmem [resolvable:$true] %s1139_s28  ;;  %s1142_s4 = int_to_ptr.hbm [resolvable:$true] %s1141_s4 }
   0x4   :  { %v1896_v17 = vld [vmem:[%s3635_s0 + $0x48] sm:$0xff]   ;;  %v1905_v22 = vld [vmem:[%s3635_s0 + $0x50] sm:$0xff]   ;;  %v1910_v23 = vld [vmem:[%s3635_s0 + $0x58] sm:$0xff]  }
   0x5   :  { %v1919_v28 = vld [vmem:[%s3635_s0 + $0x60] sm:$0xff]   ;;  %v1924_v29 = vld [vmem:[%s3635_s0 + $0x68] sm:$0xff]   ;;  %v1933_v34 = vld [vmem:[%s3635_s0 + $0x70] sm:$0xff]  }
   0x6   :  { %v1938_v35 = vld [vmem:[%s3635_s0 + $0x78] sm:$0xff]   ;;  %v1947_v40 = vld [vmem:[%s3635_s0 + $0x80] sm:$0xff]   ;;  %v1952_v41 = vld [vmem:[%s3635_s0 + $0x88] sm:$0xff]  }
   0x7   :  { %3767 = vst [vmem:[#allocation5_spill] sm:$0xff] %v1938_v35  ;;  %v1961_v46 = vld [vmem:[%s3635_s0 + $0x90] sm:$0xff]   ;;  %v1966_v47 = vld [vmem:[%s3635_s0 + $0x98] sm:$0xff]   ;;  %v1975_v52 = vld [vmem:[%s3635_s0 + $0xa0] sm:$0xff]  }
   0x8   :  { %v1980_v53 = vld [vmem:[%s3635_s0 + $0xa8] sm:$0xff]   ;;  %v1989_v58 = vld [vmem:[%s3635_s0 + $0xb0] sm:$0xff]   ;;  %v1994_v59 = vld [vmem:[%s3635_s0 + $0xb8] sm:$0xff]  }
   0x9   :  { %v2003_v51 = vld [vmem:[%s3635_s0 + $0xc0] sm:$0xff]   ;;  %v2008_v50 = vld [vmem:[%s3635_s0 + $0xc8] sm:$0xff]   ;;  %v2017_v43 = vld [vmem:[%s3635_s0 + $0xd0] sm:$0xff]  }
   0xa   :  { %v2022_v42 = vld [vmem:[%s3635_s0 + $0xd8] sm:$0xff]   ;;  %v2031_v33 = vld [vmem:[%s3635_s0 + $0xe0] sm:$0xff]   ;;  %v2036_v32 = vld [vmem:[%s3635_s0 + $0xe8] sm:$0xff]  }
   0xb   :  { %v2045_v36 = vld [vmem:[%s3635_s0 + $0xf0] sm:$0xff]   ;;  %v2050_v39 = vld [vmem:[%s3635_s0 + $0xf8] sm:$0xff]   ;;  %v2059_v37 = vld [vmem:[%s3635_s0 + $0x100] sm:$0xff]  }
   0xc   :  { %3768 = vst [vmem:[#allocation6_spill] sm:$0xff] %v2045_v36  ;;  %v2064_v44 = vld [vmem:[%s3635_s0 + $0x108] sm:$0xff]   ;;  %v2073_v38 = vld [vmem:[%s3635_s0 + $0x110] sm:$0xff]   ;;  %v2078_v45 = vld [vmem:[%s3635_s0 + $0x118] sm:$0xff]  }
   0xd   :  { %3769 = vst [vmem:[#allocation7_spill] sm:$0xff] %v2050_v39  ;;  %v2087_v30 = vld [vmem:[%s3635_s0 + $0x120] sm:$0xff]   ;;  %v2092_v48 = vld [vmem:[%s3635_s0 + $0x128] sm:$0xff]   ;;  %v2101_v31 = vld [vmem:[%s3635_s0 + $0x130] sm:$0xff]  }
   0xe   :  { %v2106_v49 = vld [vmem:[%s3635_s0 + $0x138] sm:$0xff]   ;;  %v2115_v27 = vld [vmem:[%s3635_s0 + $0x140] sm:$0xff]   ;;  %v2120_v19 = vld [vmem:[%s3635_s0 + $0x148] sm:$0xff]  }
   0xf   :  { %3770 = vst [vmem:[#allocation8_spill] sm:$0xff] %v2106_v49  ;;  %v2129_v62 = vld [vmem:[%s3635_s0 + $0x150] sm:$0xff]   ;;  %v2134_v25 = vld [vmem:[%s3635_s0 + $0x158] sm:$0xff]   ;;  %v2143_v20 = vld [vmem:[%s3635_s0 + $0x160] sm:$0xff]  }
  0x10   :  { %3771 = vst [vmem:[#allocation9_spill] sm:$0xff] %v2115_v27  ;;  %v2148_v61 = vld [vmem:[%s3635_s0 + $0x168] sm:$0xff]   ;;  %v2157_v63 = vld [vmem:[%s3635_s0 + $0x170] sm:$0xff]   ;;  %v2162_v60 = vld [vmem:[%s3635_s0 + $0x178] sm:$0xff]  }
  0x11   :  { %3772 = vst [vmem:[#allocation10_spill] sm:$0xff] %v2120_v19  ;;  %v2171_v21 = vld [vmem:[%s3635_s0 + $0x180] sm:$0xff]   ;;  %v2176_v57 = vld [vmem:[%s3635_s0 + $0x188] sm:$0xff]   ;;  %v2185_v26 = vld [vmem:[%s3635_s0 + $0x190] sm:$0xff]  }
  0x12   :  { %3773 = vst [vmem:[#allocation11_spill] sm:$0xff] %v2129_v62  ;;  %v2190_v56 = vld [vmem:[%s3635_s0 + $0x198] sm:$0xff]   ;;  %v2199_v24 = vld [vmem:[%s3635_s0 + $0x1a0] sm:$0xff]   ;;  %v2204_v54 = vld [vmem:[%s3635_s0 + $0x1a8] sm:$0xff]  }
  0x13   :  { %3774 = vst [vmem:[#allocation12_spill] sm:$0xff] %v2134_v25  ;;  %v2213_v18 = vld [vmem:[%s3635_s0 + $0x1b0] sm:$0xff]   ;;  %v2218_v12 = vld [vmem:[%s3635_s0 + $0x1b8] sm:$0xff]   ;;  %v2227_v15 = vld [vmem:[%s3635_s0 + $0x1c0] sm:$0xff]  }
  0x14   :  { %3775 = vst [vmem:[#allocation13_spill] sm:$0xff] %v2143_v20  ;;  %v2232_v8 = vld [vmem:[%s3635_s0 + $0x1c8] sm:$0xff]   ;;  %v2241_v14 = vld [vmem:[%s3635_s0 + $0x1d0] sm:$0xff]   ;;  %v2246_v6 = vld [vmem:[%s3635_s0 + $0x1d8] sm:$0xff]  }
  0x15   :  { %3776 = vst [vmem:[#allocation14_spill] sm:$0xff] %v2148_v61  ;;  %v2255_v55 = vld [vmem:[%s3635_s0 + $0x1e0] sm:$0xff]   ;;  %v2269_v13 = vld [vmem:[%s3635_s0 + $0x1f0] sm:$0xff]   ;;  %v2274_v39 = vld [vmem:[%s3635_s0 + $0x1f8] sm:$0xff]  }
  0x16   :  { %3777 = vst [vmem:[#allocation15_spill] sm:$0xff] %v2157_v63  ;;  %v2260_v63 = vld [vmem:[%s3635_s0 + $0x1e8] sm:$0xff]   ;;  %v2283_v9 = vld [vmem:[%s3635_s0 + $0x200] sm:$0xff]   ;;  %v2297_v7 = vld [vmem:[%s3635_s0 + $0x210] sm:$0xff]  }
  0x17   :  { %3778 = vst [vmem:[#allocation16_spill] sm:$0xff] %v2162_v60  ;;  %v2311_v60 = vld [vmem:[%s3635_s0 + $0x220] sm:$0xff]   ;;  %v2325_v61 = vld [vmem:[%s3635_s0 + $0x230] sm:$0xff]   ;;  %v2344_v25 = vld [vmem:[%s3635_s0 + $0x248] sm:$0xff]  }
  0x18   :  { %3779 = vst [vmem:[#allocation17_spill] sm:$0xff] %v2218_v12  ;;  %v2339_v20 = vld [vmem:[%s3635_s0 + $0x240] sm:$0xff]   ;;  %v2358_v36 = vld [vmem:[%s3635_s0 + $0x258] sm:$0xff]   ;;  %v2372_v19 = vld [vmem:[%s3635_s0 + $0x268] sm:$0xff]  }
  0x19   :  { %3780 = vst [vmem:[#allocation18_spill] sm:$0xff] %v2227_v15  ;;  %v2353_v15 = vld [vmem:[%s3635_s0 + $0x250] sm:$0xff]   ;;  %v2390_v12 = vld [vmem:[%s3635_s0 + $0x278] sm:$0xff]   ;;  %v2398_v35 = vld [vmem:[%s3635_s0 + $0x280] sm:$0xff]  }
  0x1a   :  { %3781 = vst [vmem:[#allocation19_spill] sm:$0xff] %v2232_v8  ;;  %v2288_v8 = vld [vmem:[%s3635_s0 + $0x208] sm:$0xff]   ;;  %v2385_v27 = vld [vmem:[%s3635_s0 + $0x270] sm:$0xff]  }
  0x1b   :  { %3782 = vst [vmem:[#allocation20_spill] sm:$0xff] %v2241_v14  ;;  %v2367_v14 = vld [vmem:[%s3635_s0 + $0x260] sm:$0xff]   ;;  %v2404_v62 = vld [vmem:[%s3635_s0 + $0x288] sm:$0xff]  }
  0x1c   :  { %3783 = vst [vmem:[#allocation21_spill] sm:$0xff] %v2246_v6  ;;  %v2302_v6 = vld [vmem:[%s3635_s0 + $0x218] sm:$0xff]  }
  0x1d   :  { %3784 = vst [vmem:[#allocation22_spill] sm:$0xff] %v2255_v55 }
  0x1e   :  { %3785 = vst [vmem:[#allocation23_spill] sm:$0xff] %v2260_v63  ;;  %v2316_v63 = vld [vmem:[%s3635_s0 + $0x228] sm:$0xff]  }
  0x1f   :  { %3786 = vst [vmem:[#allocation24_spill] sm:$0xff] %v2269_v13  ;;  %v2409_v13 = vld [vmem:[%s3635_s0 + $0x290] sm:$0xff]  }
  0x20   :  { %3787 = vst [vmem:[#allocation25_spill] sm:$0xff] %v2274_v39  ;;  %v2330_v39 = vld [vmem:[%s3635_s0 + $0x238] sm:$0xff]  }
  0x21   :  { %3788 = vst [vmem:[#allocation26_spill] sm:$0xff] %v2316_v63  ;;  %v3802_v63 = vunpack.c.h.bf16 %v1843_v0 }
  0x22   :  { %3789 = vst [vmem:[#allocation27_spill] sm:$0xff] %v2325_v61  ;;  %v3803_v61 = vunpack.c.l.bf16 %v1848_v1 }
  0x23   :  { %3790 = vst [vmem:[#allocation28_spill] sm:$0xff] %v2330_v39  ;;  %v3801_v39 = vunpack.c.l.bf16 %v1843_v0  ;;  %v3813_v0 = vunpack.c.l.bf16 %v1947_v40 }
  0x24   :  { %3791 = vst [vmem:[#allocation29_spill] sm:$0xff] %v2339_v20  ;;  %v2426_v20 = vld [vmem:[%s3635_s0 + $0x298] sm:$0xff]  }
  0x25   :  { %3792 = vst [vmem:[#allocation30_spill] sm:$0xff] %v2344_v25  ;;  %v528_v55 = vsel %vm527_vm0, %v3801_v39, 0.0  ;;  %v2439_v25 = vld [vmem:[%s3635_s0 + $0x2a8] sm:$0xff]  }
  0x26   :  { %3793 = vst [vmem:[#allocation31_spill] sm:$0xff] %v2353_v15  ;;  %v3807_v15 = vunpack.c.h.bf16 %v1848_v1  ;;  %v3809_v1 = vunpack.c.l.bf16 %v1853_v2 }
  0x27   :  { %3794 = vst [vmem:[#allocation32_spill] sm:$0xff] %v2358_v36  ;;  %v597_v36 = vsel %vm527_vm0, %v3813_v0, 0.0 }
  0x28   :  { %3795 = vst [vmem:[#allocation33_spill] sm:$0xff] %v2367_v14  ;;  %v529_v14 = vsel %vm527_vm0, %v3802_v63, 0.0  ;;  %v3812_v63 = vunpack.c.h.bf16 %v1853_v2  ;;  %v2488_v2 = vld [vmem:[%s3635_s0 + $0x2c8] sm:$0xff]  }
  0x29   :  { %3796 = vst [vmem:[#allocation34_spill] sm:$0xff] %v2372_v19  ;;  %v531_v19 = vsel %vm527_vm0, %v3803_v61, 0.0  ;;  %v530_v39 = vadd.f32 %v529_v14, %v528_v55  ;;  %v2434_v61 = vld [vmem:[%s3635_s0 + $0x2a0] sm:$0xff]   ;;  %v533_v14 = vsel %vm527_vm0, %v3807_v15, 0.0  ;;  %v535_v15 = vsel %vm527_vm0, %v3809_v1, 0.0 }
  0x2a   :  { %3797 = vst [vmem:[#allocation35_spill] sm:$0xff] %v2385_v27  ;;  %v537_v1 = vsel %vm527_vm0, %v3812_v63, 0.0 }
  0x2b   :  { %3798 = vst [vmem:[#allocation36_spill] sm:$0xff] %v2390_v12  ;;  %v532_v49 = vadd.f32 %v531_v19, %v530_v39  ;;  %v2464_v39 = vld [vmem:[%s3635_s0 + $0x2b8] sm:$0xff]   ;;  %v2469_v12 = vld [vmem:[%s3635_s0 + $0x2c0] sm:$0xff]   ;;  %v3814_v19 = vunpack.c.h.bf16 %v1947_v40 }
  0x2c   :  { %3799 = vst [vmem:[#allocation37_spill] sm:$0xff] %v2398_v35  ;;  %v2453_v35 = vld [vmem:[%s3635_s0 + $0x2b0] sm:$0xff]  }
  0x2d   :  { %3800 = vst [vmem:[#allocation38_spill] sm:$0xff] %v2409_v13  ;;  %v534_v27 = vadd.f32 %v533_v14, %v532_v49  ;;  %v598_v55 = vsel %vm527_vm0, %v3814_v19, 0.0  ;;  %v2495_v19 = vld [vmem:[%s3635_s0 + $0x2d0] sm:$0xff]   ;;  %v3819_v14 = vunpack.c.h.bf16 %v1952_v41 }
  0x2e   :  { %3804 = vst [vmem:[#allocation39_spill] sm:$0xff] %v2426_v20  ;;  %v599_v13 = vadd.f32 %v598_v55, %v597_v36  ;;  %v2508_v55 = vld [vmem:[%s3635_s0 + $0x2d8] sm:$0xff]   ;;  %v2520_v36 = vld [vmem:[%s3635_s0 + $0x2e8] sm:$0xff]  }
  0x2f   :  { %3805 = vst [vmem:[#allocation40_spill] sm:$0xff] %v2434_v61  ;;  %v3815_v61 = vunpack.c.l.bf16 %v1952_v41  ;;  %v536_v63 = vadd.f32 %v535_v15, %v534_v27  ;;  %v2513_v15 = vld [vmem:[%s3635_s0 + $0x2e0] sm:$0xff]   ;;  %v3823_v27 = vunpack.c.h.bf16 %v1858_v3  ;;  %v3827_v41 = vunpack.c.l.bf16 %v1863_v4 }
  0x30   :  { %3806 = vst [vmem:[#allocation41_spill] sm:$0xff] %v2439_v25  ;;  %v602_v25 = vsel %vm527_vm0, %v3819_v14, 0.0 }
  0x31   :  { %3808 = vst [vmem:[#allocation42_spill] sm:$0xff] %v2453_v35  ;;  %v600_v49 = vsel %vm527_vm0, %v3815_v61, 0.0  ;;  %v3818_v61 = vunpack.c.l.bf16 %v1858_v3  ;;  %v538_v40 = vadd.f32 %v537_v1, %v536_v63  ;;  %v541_v0 = vsel %vm527_vm0, %v3823_v27, 0.0  ;;  %v2537_v27 = vld [vmem:[%s3635_s0 + $0x2f0] sm:$0xff]  }
  0x32   :  { %3810 = vst [vmem:[#allocation43_spill] sm:$0xff] %v2464_v39  ;;  %v3824_v39 = vunpack.c.l.bf16 %v1961_v46  ;;  %v543_v14 = vsel %vm527_vm0, %v3827_v41, 0.0  ;;  %v2588_v41 = vld [vmem:[%s3635_s0 + $0x320] sm:$0xff]  }
  0x33   :  { %3811 = vst [vmem:[#allocation44_spill] sm:$0xff] %v2469_v12  ;;  %v539_v20 = vsel %vm527_vm0, %v3818_v61, 0.0  ;;  %v601_v61 = vadd.f32 %v600_v49, %v599_v13  ;;  %v2554_v12 = vld [vmem:[%s3635_s0 + $0x308] sm:$0xff]   ;;  %v3829_v13 = vunpack.c.l.bf16 %v2059_v37 }
  0x34   :  { %3816 = vst [vmem:[#allocation45_spill] sm:$0xff] %v2488_v2  ;;  %v604_v35 = vsel %vm527_vm0, %v3824_v39, 0.0  ;;  %v540_v49 = vadd.f32 %v539_v20, %v538_v40  ;;  %v2542_v39 = vld [vmem:[%s3635_s0 + $0x2f8] sm:$0xff]   ;;  %v2549_v40 = vld [vmem:[%s3635_s0 + $0x300] sm:$0xff]   ;;  %v3828_v20 = vunpack.c.h.bf16 %v1961_v46  ;;  %v2575_v46 = vld [vmem:[%s3635_s0 + $0x310] sm:$0xff]  }
  0x35   :  { %3817 = vst [vmem:[#allocation46_spill] sm:$0xff] %v2495_v19  ;;  %v603_v63 = vadd.f32 %v602_v25, %v601_v61  ;;  %v666_v1 = vsel %vm527_vm0, %v3829_v13, 0.0  ;;  %v3832_v13 = vunpack.c.l.bf16 %v2064_v44  ;;  %v2663_v2 = vld [vmem:[%s3635_s0 + $0x360] sm:$0xff]  }
  0x36   :  { %3820 = vst [vmem:[#allocation47_spill] sm:$0xff] %v2508_v55  ;;  %v542_v61 = vadd.f32 %v541_v0, %v540_v49  ;;  %v606_v25 = vsel %vm527_vm0, %v3828_v20, 0.0  ;;  %v3830_v0 = vunpack.c.h.bf16 %v2059_v37  ;;  %v2594_v20 = vld [vmem:[%s3635_s0 + $0x328] sm:$0xff]  }
  0x37   :  { %3821 = vst [vmem:[#allocation48_spill] sm:$0xff] %v2513_v15  ;;  %v605_v3 = vadd.f32 %v604_v35, %v603_v63 }
  0x38   :  { %3822 = vst [vmem:[#allocation49_spill] sm:$0xff] %v2520_v36  ;;  %v667_v35 = vsel %vm527_vm0, %v3830_v0, 0.0  ;;  %v2583_v0 = vld [vmem:[%s3635_s0 + $0x318] sm:$0xff]   ;;  %v544_v49 = vadd.f32 %v543_v14, %v542_v61  ;;  %v3834_v14 = vunpack.c.l.bf16 %v1966_v47  ;;  %v2632_v36 = vld [vmem:[%s3635_s0 + $0x348] sm:$0xff]  }
  0x39   :  { %3825 = vst [vmem:[#allocation50_spill] sm:$0xff] %v2537_v27  ;;  %v668_v15 = vadd.f32 %v667_v35, %v666_v1  ;;  %v607_v37 = vadd.f32 %v606_v25, %v605_v3  ;;  %v2604_v1 = vld [vmem:[%s3635_s0 + $0x330] sm:$0xff]   ;;  %v3833_v35 = vunpack.c.h.bf16 %v1863_v4  ;;  %v2619_v27 = vld [vmem:[%s3635_s0 + $0x338] sm:$0xff]   ;;  %v3839_v25 = vunpack.c.h.bf16 %v2064_v44 }
  0x3a   :  { %3826 = vst [vmem:[#allocation51_spill] sm:$0xff] %v2542_v39  ;;  %v669_v39 = vsel %vm527_vm0, %v3832_v13, 0.0  ;;  %v608_v3 = vsel %vm527_vm0, %v3834_v14, 0.0  ;;  %v2627_v14 = vld [vmem:[%s3635_s0 + $0x340] sm:$0xff]   ;;  %v2638_v4 = vld [vmem:[%s3635_s0 + $0x350] sm:$0xff]   ;;  %v3847_v44 = vunpack.c.l.bf16 %v2073_v38 }
  0x3b   :  { %3831 = vst [vmem:[#allocation52_spill] sm:$0xff] %v2594_v20  ;;  %v545_v63 = vsel %vm527_vm0, %v3833_v35, 0.0  ;;  %v670_v13 = vadd.f32 %v669_v39, %v668_v15  ;;  %v609_v55 = vadd.f32 %v608_v3, %v607_v37  ;;  %v671_v19 = vsel %vm527_vm0, %v3839_v25, 0.0  ;;  %v2648_v15 = vld [vmem:[%s3635_s0 + $0x358] sm:$0xff]   ;;  %v2676_v25 = vld [vmem:[%s3635_s0 + $0x370] sm:$0xff]  }
  0x3c   :  { %3835 = vst [vmem:[#allocation53_spill] sm:$0xff] %v2619_v27  ;;  %v546_v35 = vadd.f32 %v545_v63, %v544_v49  ;;  %v3841_v39 = vunpack.c.l.bf16 %v1868_v5  ;;  %v3842_v49 = vunpack.c.h.bf16 %v1966_v47  ;;  %v2682_v20 = vld [vmem:[%s3635_s0 + $0x378] sm:$0xff]  }
  0x3d   :  { %3836 = vst [vmem:[#allocation54_spill] sm:$0xff] %v2627_v14  ;;  %v672_v3 = vadd.f32 %v671_v19, %v670_v13  ;;  %v2692_v19 = vld [vmem:[%s3635_s0 + $0x380] sm:$0xff]   ;;  %v3848_v13 = vunpack.c.h.bf16 %v1868_v5 }
  0x3e   :  { %3837 = vst [vmem:[#allocation55_spill] sm:$0xff] %v2632_v36  ;;  %v547_v61 = vsel %vm527_vm0, %v3841_v39, 0.0  ;;  %v610_v63 = vsel %vm527_vm0, %v3842_v49, 0.0  ;;  %v2671_v49 = vld [vmem:[%s3635_s0 + $0x368] sm:$0xff]   ;;  %v3850_v36 = vunpack.c.h.bf16 %v2073_v38 }
  0x3f   :  { %3838 = vst [vmem:[#allocation56_spill] sm:$0xff] %v2638_v4  ;;  %v548_v39 = vadd.f32 %v547_v61, %v546_v35  ;;  %v611_v47 = vadd.f32 %v610_v63, %v609_v55  ;;  %v673_v4 = vsel %vm527_vm0, %v3847_v44, 0.0  ;;  %v549_v37 = vsel %vm527_vm0, %v3848_v13, 0.0  ;;  %v2710_v13 = vld [vmem:[%s3635_s0 + $0x388] sm:$0xff]  }
  0x40   :  { %3840 = vst [vmem:[#allocation57_spill] sm:$0xff] %v2648_v15  ;;  %v3849_v61 = vunpack.c.l.bf16 %v1975_v52  ;;  %v674_v63 = vadd.f32 %v673_v4, %v672_v3  ;;  %v675_v15 = vsel %vm527_vm0, %v3850_v36, 0.0  ;;  %v3853_v4 = vunpack.c.l.bf16 %v2171_v21 }
  0x41   :  { %3843 = vst [vmem:[#allocation58_spill] sm:$0xff] %v2663_v2  ;;  %v550_v14 = vadd.f32 %v549_v37, %v548_v39  ;;  %v2737_v39 = vld [vmem:[%s3635_s0 + $0x398] sm:$0xff]   ;;  %v3855_v36 = vunpack.c.l.bf16 %v2176_v57  ;;  %v2754_v37 = vld [vmem:[%s3635_s0 + $0x3a8] sm:$0xff]   ;;  %v3858_v44 = vunpack.c.h.bf16 %v2176_v57  ;;  %v2775_v57 = vld [vmem:[%s3635_s0 + $0x3b0] sm:$0xff]  }
  0x42   :  { %3844 = vst [vmem:[#allocation59_spill] sm:$0xff] %v2671_v49  ;;  %v612_v55 = vsel %vm527_vm0, %v3849_v61, 0.0  ;;  %v2715_v61 = vld [vmem:[%s3635_s0 + $0x390] sm:$0xff]   ;;  %v3852_v49 = vunpack.c.h.bf16 %v1975_v52  ;;  %v735_v3 = vsel %vm527_vm0, %v3853_v4, 0.0 }
  0x43   :  { %3845 = vst [vmem:[#allocation60_spill] sm:$0xff] %v2676_v25  ;;  %v613_v35 = vadd.f32 %v612_v55, %v611_v47  ;;  %v676_v55 = vadd.f32 %v675_v15, %v674_v63  ;;  %v738_v38 = vsel %vm527_vm0, %v3855_v36, 0.0  ;;  %v3857_v47 = vunpack.c.l.bf16 %v2078_v45 }
  0x44   :  { %3846 = vst [vmem:[#allocation61_spill] sm:$0xff] %v2682_v20  ;;  %v3851_v20 = vunpack.c.l.bf16 %v1877_v10  ;;  %v614_v2 = vsel %vm527_vm0, %v3852_v49, 0.0  ;;  %v2746_v49 = vld [vmem:[%s3635_s0 + $0x3a0] sm:$0xff]   ;;  %v740_v15 = vsel %vm527_vm0, %v3858_v44, 0.0 }
  0x45   :  { %3856 = vst [vmem:[#allocation62_spill] sm:$0xff] %v2754_v37  ;;  %v677_v5 = vsel %vm527_vm0, %v3857_v47, 0.0 }
  0x46   :  { %v551_v25 = vsel %vm527_vm0, %v3851_v20, 0.0  ;;  %v3854_v20 = vunpack.c.h.bf16 %v2171_v21 }
  0x47   :  { %v552_v21 = vadd.f32 %v551_v25, %v550_v14 }
  0x48   :  { %v736_v52 = vsel %vm527_vm0, %v3854_v20, 0.0  ;;  %v615_v20 = vadd.f32 %v614_v2, %v613_v35  ;;  %v2790_v35 = vld [vmem:[%s3635_s0 + $0x3c0] sm:$0xff]  }
  0x49   :  { %v737_v4 = vadd.f32 %v736_v52, %v735_v3  ;;  %v3859_v3 = vunpack.c.h.bf16 %v1877_v10  ;;  %v3860_v52 = vunpack.c.l.bf16 %v1980_v53  ;;  %v3861_v10 = vunpack.c.l.bf16 %v2185_v26  ;;  %3863 = vst [vmem:[#allocation64_spill] sm:$0xff] %v2790_v35 }
  0x4b   :  { %v553_v36 = vsel %vm527_vm0, %v3859_v3, 0.0  ;;  %v616_v27 = vsel %vm527_vm0, %v3860_v52, 0.0  ;;  %v739_v14 = vadd.f32 %v738_v38, %v737_v4  ;;  %v742_v44 = vsel %vm527_vm0, %v3861_v10, 0.0  ;;  %v2785_v38 = vld [vmem:[%s3635_s0 + $0x3b8] sm:$0xff]  }
  0x4c   :  { %3862 = vst [vmem:[#allocation63_spill] sm:$0xff] %v2785_v38  ;;  %v678_v4 = vadd.f32 %v677_v5, %v676_v55  ;;  %v554_v25 = vadd.f32 %v553_v36, %v552_v21  ;;  %v617_v2 = vadd.f32 %v616_v27, %v615_v20  ;;  %v3864_v10 = vunpack.c.h.bf16 %v2078_v45 }
  0x4d   :  { %v741_v52 = vadd.f32 %v740_v15, %v739_v14  ;;  %v3865_v3 = vunpack.c.h.bf16 %v2185_v26  ;;  %v3866_v5 = vunpack.c.l.bf16 %v1882_v11  ;;  %v3867_v15 = vunpack.c.h.bf16 %v1980_v53  ;;  %v2811_v26 = vld [vmem:[%s3635_s0 + $0x3c8] sm:$0xff]  }
  0x4e   :  { %v679_v47 = vsel %vm527_vm0, %v3864_v10, 0.0  ;;  %3868 = vst [vmem:[#allocation65_spill] sm:$0xff] %v2811_v26  ;;  %v3869_v36 = vunpack.c.l.bf16 %v2190_v56  ;;  %v3873_v10 = vunpack.c.h.bf16 %v2190_v56  ;;  %v3901_v38 = vunpack.c.l.bf16 %v1919_v28 }
  0x4f   :  { %v744_v63 = vsel %vm527_vm0, %v3865_v3, 0.0  ;;  %v555_v55 = vsel %vm527_vm0, %v3866_v5, 0.0  ;;  %v618_v14 = vsel %vm527_vm0, %v3867_v15, 0.0  ;;  %v743_v21 = vadd.f32 %v742_v44, %v741_v52  ;;  %v2821_v44 = vld [vmem:[%s3635_s0 + $0x3d0] sm:$0xff]   ;;  %v2826_v15 = vld [vmem:[%s3635_s0 + $0x3d8] sm:$0xff]  }
  0x50   :  { %v746_v3 = vsel %vm527_vm0, %v3869_v36, 0.0  ;;  %3870 = vst [vmem:[#allocation66_spill] sm:$0xff] %v2821_v44  ;;  %v680_v52 = vadd.f32 %v679_v47, %v678_v4  ;;  %v556_v20 = vadd.f32 %v555_v55, %v554_v25  ;;  %v619_v45 = vadd.f32 %v618_v14, %v617_v2 }
  0x51   :  { %v745_v5 = vadd.f32 %v744_v63, %v743_v21  ;;  %3871 = vst [vmem:[#allocation67_spill] sm:$0xff] %v2826_v15  ;;  %v3872_v36 = vunpack.c.l.bf16 %v2087_v30  ;;  %v748_v27 = vsel %vm527_vm0, %v3873_v10, 0.0  ;;  %v2838_v63 = vld [vmem:[%s3635_s0 + $0x3e0] sm:$0xff]   ;;  %v3875_v47 = vunpack.c.h.bf16 %v1882_v11 }
  0x52   :  { %3874 = vst [vmem:[#allocation68_spill] sm:$0xff] %v2838_v63  ;;  %v3876_v2 = vunpack.c.l.bf16 %v1989_v58  ;;  %v3877_v10 = vunpack.c.l.bf16 %v2199_v24  ;;  %v3879_v21 = vunpack.c.l.bf16 %v1891_v16  ;;  %v3881_v11 = vunpack.c.h.bf16 %v1989_v58 }
  0x53   :  { %v681_v53 = vsel %vm527_vm0, %v3872_v36, 0.0  ;;  %v557_v25 = vsel %vm527_vm0, %v3875_v47, 0.0  ;;  %v747_v55 = vadd.f32 %v746_v3, %v745_v5  ;;  %v3878_v5 = vunpack.c.h.bf16 %v2087_v30 }
  0x54   :  { %v620_v4 = vsel %vm527_vm0, %v3876_v2, 0.0  ;;  %v750_v36 = vsel %vm527_vm0, %v3877_v10, 0.0  ;;  %v682_v47 = vadd.f32 %v681_v53, %v680_v52  ;;  %v558_v2 = vadd.f32 %v557_v25, %v556_v20 }
  0x55   :  { %v749_v35 = vadd.f32 %v748_v27, %v747_v55  ;;  %v621_v3 = vadd.f32 %v620_v4, %v619_v45  ;;  %v683_v14 = vsel %vm527_vm0, %v3878_v5, 0.0  ;;  %v559_v56 = vsel %vm527_vm0, %v3879_v21, 0.0 }
  0x56   :  { %v3880_v10 = vunpack.c.h.bf16 %v1891_v16  ;;  %v622_v27 = vsel %vm527_vm0, %v3881_v11, 0.0  ;;  %v3882_v20 = vunpack.c.l.bf16 %v1896_v17  ;;  %v3883_v30 = vunpack.c.h.bf16 %v1896_v17 }
  0x57   :  { %v751_v53 = vadd.f32 %v750_v36, %v749_v35  ;;  %v3884_v25 = vunpack.c.l.bf16 %v1905_v22  ;;  %v3885_v16 = vunpack.c.h.bf16 %v2199_v24  ;;  %v3886_v55 = vunpack.c.h.bf16 %v1905_v22 }
  0x58   :  { %v561_v37 = vsel %vm527_vm0, %v3880_v10, 0.0  ;;  %v563_v45 = vsel %vm527_vm0, %v3882_v20, 0.0  ;;  %v565_v52 = vsel %vm527_vm0, %v3883_v30, 0.0  ;;  %v684_v21 = vadd.f32 %v683_v14, %v682_v47 }
  0x59   :  { %v2876_v4 = vsel %vm527_vm0, %v3884_v25, 0.0  ;;  %v752_v58 = vsel %vm527_vm0, %v3885_v16, 0.0  ;;  %v2884_v35 = vsel %vm527_vm0, %v3886_v55, 0.0  ;;  %v3887_v36 = vunpack.c.l.bf16 %v2283_v9 }
  0x5a   :  { %v3888_v11 = vunpack.c.h.bf16 %v2283_v9  ;;  %v560_v10 = vadd.f32 %v559_v56, %v558_v2  ;;  %v623_v20 = vadd.f32 %v622_v27, %v621_v3  ;;  %v3889_v24 = vunpack.c.l.bf16 %v2092_v48 }
  0x5b   :  { %v804_v17 = vsel %vm527_vm0, %v3887_v36, 0.0  ;;  %v3890_v22 = vunpack.c.l.bf16 %v2288_v8  ;;  %v3891_v14 = vunpack.c.l.bf16 %v1910_v23  ;;  %v3892_v16 = vunpack.c.l.bf16 %v1994_v59 }
  0x5c   :  { %v805_v5 = vsel %vm527_vm0, %v3888_v11, 0.0  ;;  %v685_v30 = vsel %vm527_vm0, %v3889_v24, 0.0  ;;  %v753_v55 = vadd.f32 %v752_v58, %v751_v53  ;;  %v3893_v2 = vunpack.c.h.bf16 %v1910_v23 }
  0x5d   :  { %v807_v25 = vsel %vm527_vm0, %v3890_v22, 0.0  ;;  %v2901_v47 = vsel %vm527_vm0, %v3891_v14, 0.0  ;;  %v624_v9 = vsel %vm527_vm0, %v3892_v16, 0.0  ;;  %v806_v56 = vadd.f32 %v805_v5, %v804_v17 }
  0x5e   :  { %v2909_v3 = vsel %vm527_vm0, %v3893_v2, 0.0  ;;  %v3894_v27 = vunpack.c.h.bf16 %v1994_v59  ;;  %v3895_v11 = vunpack.c.l.bf16 %v2204_v54  ;;  %v3896_v22 = vunpack.c.h.bf16 %v2288_v8 }
  0x5f   :  { %v3897_v53 = vunpack.c.l.bf16 %v2003_v51  ;;  %v3898_v23 = vunpack.c.h.bf16 %v2003_v51  ;;  %v686_v5 = vadd.f32 %v685_v30, %v684_v21  ;;  %v808_v59 = vadd.f32 %v807_v25, %v806_v56 }
  0x60   :  { %v626_v36 = vsel %vm527_vm0, %v3894_v27, 0.0  ;;  %v754_v24 = vsel %vm527_vm0, %v3895_v11, 0.0  ;;  %v809_v14 = vsel %vm527_vm0, %v3896_v22, 0.0  ;;  %v562_v16 = vadd.f32 %v561_v37, %v560_v10 }
  0x61   :  { %v628_v58 = vsel %vm527_vm0, %v3897_v53, 0.0  ;;  %v630_v17 = vsel %vm527_vm0, %v3898_v23, 0.0  ;;  %v625_v2 = vadd.f32 %v624_v9, %v623_v20  ;;  %v3899_v27 = vunpack.c.h.bf16 %v2092_v48 }
  0x62   :  { %v3900_v8 = vunpack.c.l.bf16 %v2297_v7  ;;  %v2935_v53 = vsel %vm527_vm0, %v3901_v38, 0.0  ;;  %v3902_v51 = vunpack.c.l.bf16 %v2008_v50  ;;  %v755_v30 = vadd.f32 %v754_v24, %v753_v55 }
  0x63   :  { %v687_v11 = vsel %vm527_vm0, %v3899_v27, 0.0  ;;  %v810_v37 = vadd.f32 %v809_v14, %v808_v59  ;;  %v3903_v10 = vunpack.c.h.bf16 %v2008_v50  ;;  %v3904_v20 = vunpack.c.l.bf16 %v2017_v43 }
  0x64   :  { %v811_v22 = vsel %vm527_vm0, %v3900_v8, 0.0  ;;  %v632_v21 = vsel %vm527_vm0, %v3902_v51, 0.0  ;;  %v3905_v9 = vunpack.c.h.bf16 %v2204_v54  ;;  %v3906_v56 = vunpack.c.h.bf16 %v2297_v7 }
  0x65   :  { %v2943_v48 = vsel %vm527_vm0, %v3903_v10, 0.0  ;;  %v2948_v25 = vsel %vm527_vm0, %v3904_v20, 0.0  ;;  %v3907_v55 = vunpack.c.h.bf16 %v1919_v28  ;;  %v3908_v24 = vunpack.c.h.bf16 %v2017_v43 }
  0x66   :  { %v756_v38 = vsel %vm527_vm0, %v3905_v9, 0.0  ;;  %v813_v23 = vsel %vm527_vm0, %v3906_v56, 0.0  ;;  %v688_v59 = vadd.f32 %v687_v11, %v686_v5  ;;  %v812_v27 = vadd.f32 %v811_v22, %v810_v37 }
  0x67   :  { %v2959_v50 = vsel %vm527_vm0, %v3907_v55, 0.0  ;;  %v2964_v14 = vsel %vm527_vm0, %v3908_v24, 0.0  ;;  %v564_v8 = vadd.f32 %v563_v45, %v562_v16  ;;  %v627_v54 = vadd.f32 %v626_v36, %v625_v2 }
  0x68   :  { %v3909_v51 = vunpack.c.l.bf16 %v2101_v31  ;;  %v3910_v10 = vunpack.c.l.bf16 %v2302_v6  ;;  %v3911_v20 = vunpack.c.l.bf16 %v1924_v29  ;;  %v3912_v43 = vunpack.c.l.bf16 %v2022_v42 }
  0x69   :  { %v757_v45 = vadd.f32 %v756_v38, %v755_v30  ;;  %v814_v36 = vadd.f32 %v813_v23, %v812_v27  ;;  %v3913_v16 = vunpack.c.h.bf16 %v1924_v29  ;;  %v3914_v11 = vunpack.c.h.bf16 %v2022_v42 }
  0x6a   :  { %v689_v7 = vsel %vm527_vm0, %v3909_v51, 0.0  ;;  %v815_v28 = vsel %vm527_vm0, %v3910_v10, 0.0  ;;  %v2975_v9 = vsel %vm527_vm0, %v3911_v20, 0.0  ;;  %v2980_v5 = vsel %vm527_vm0, %v3912_v43, 0.0 }
  0x6b   :  { %v2985_v2 = vsel %vm527_vm0, %v3913_v16, 0.0  ;;  %v2990_v22 = vsel %vm527_vm0, %v3914_v11, 0.0  ;;  %v3915_v37 = vunpack.c.l.bf16 %v2213_v18  ;;  %v3916_v55 = vunpack.c.h.bf16 %v2302_v6 }
  0x6c   :  { %v3917_v30 = vunpack.c.l.bf16 %v1933_v34  ;;  %v3918_v38 = vunpack.c.l.bf16 %v2031_v33  ;;  %v690_v23 = vadd.f32 %v689_v7, %v688_v59  ;;  %v816_v27 = vadd.f32 %v815_v28, %v814_v36 }
  0x6d   :  { %v758_v56 = vsel %vm527_vm0, %v3915_v37, 0.0  ;;  %v817_v24 = vsel %vm527_vm0, %v3916_v55, 0.0  ;;  %v566_v51 = vadd.f32 %v565_v52, %v564_v8  ;;  %v629_v10 = vadd.f32 %v628_v58, %v627_v54  ;;  %v3924_v54 = vld [vmem:[#allocation8_spill] sm:$0xff] }
  0x6e   :  { %v3001_v29 = vsel %vm527_vm0, %v3917_v30, 0.0  ;;  %v3006_v42 = vsel %vm527_vm0, %v3918_v38, 0.0  ;;  %v3919_v20 = vunpack.c.h.bf16 %v2101_v31  ;;  %v3920_v43 = vunpack.c.l.bf16 %v2311_v60 }
  0x6f   :  { %v3921_v11 = vunpack.c.h.bf16 %v1933_v34  ;;  %v3922_v55 = vunpack.c.h.bf16 %v2031_v33  ;;  %v759_v52 = vadd.f32 %v758_v56, %v757_v45  ;;  %v818_v58 = vadd.f32 %v817_v24, %v816_v27  ;;  %v3929_v24 = vld [vmem:[#allocation9_spill] sm:$0xff] }
  0x70   :  { %v691_v6 = vsel %vm527_vm0, %v3919_v20, 0.0  ;;  %v819_v16 = vsel %vm527_vm0, %v3920_v43, 0.0  ;;  %v3923_v31 = vunpack.c.l.bf16 %v2036_v32  ;;  %v3925_v7 = vunpack.c.l.bf16 %v3924_v54 }
  0x71   :  { %v3017_v37 = vsel %vm527_vm0, %v3921_v11, 0.0  ;;  %v3022_v59 = vsel %vm527_vm0, %v3922_v55, 0.0  ;;  %v3926_v34 = vunpack.c.h.bf16 %v2213_v18  ;;  %v3927_v33 = vunpack.c.h.bf16 %v2311_v60  ;;  %v3931_v55 = vld [vmem:[#allocation5_spill] sm:$0xff] }
  0x72   :  { %v3027_v8 = vsel %vm527_vm0, %v3923_v31, 0.0  ;;  %v693_v28 = vsel %vm527_vm0, %v3925_v7, 0.0  ;;  %v692_v38 = vadd.f32 %v691_v6, %v690_v23  ;;  %v3928_v45 = vunpack.c.h.bf16 %v3924_v54  ;;  %v3934_v7 = vld [vmem:[#allocation26_spill] sm:$0xff] }
  0x73   :  { %v760_v36 = vsel %vm527_vm0, %v3926_v34, 0.0  ;;  %v821_v30 = vsel %vm527_vm0, %v3927_v33, 0.0  ;;  %v3930_v27 = vunpack.c.l.bf16 %v3929_v24  ;;  %v820_v43 = vadd.f32 %v819_v16, %v818_v58  ;;  %v3938_v58 = vld [vmem:[#allocation10_spill] sm:$0xff] }
  0x74   :  { %v695_v56 = vsel %vm527_vm0, %v3928_v45, 0.0  ;;  %v568_v11 = vadd.f32 %v2876_v4, %v566_v51  ;;  %v3932_v18 = vunpack.c.l.bf16 %v3931_v55  ;;  %v631_v60 = vadd.f32 %v630_v17, %v629_v10 }
  0x75   :  { %v697_v20 = vsel %vm527_vm0, %v3930_v27, 0.0  ;;  %v3935_v34 = vunpack.c.l.bf16 %v3934_v7  ;;  %v3936_v6 = vunpack.c.h.bf16 %v2036_v32  ;;  %v3937_v33 = vunpack.c.h.bf16 %v3929_v24  ;;  %v3941_v32 = vld [vmem:[#allocation17_spill] sm:$0xff] }
  0x76   :  { %v3048_v31 = vsel %vm527_vm0, %v3932_v18, 0.0  ;;  %v761_v4 = vadd.f32 %v760_v36, %v759_v52  ;;  %v822_v51 = vadd.f32 %v821_v30, %v820_v43  ;;  %v3939_v45 = vunpack.c.l.bf16 %v3938_v58  ;;  %v3946_v30 = vld [vmem:[#allocation6_spill] sm:$0xff] }
  0x77   :  { %3933 = vst [vmem:[#allocation8_spill] sm:$0xff] %v3048_v31  ;;  %v823_v23 = vsel %vm527_vm0, %v3935_v34, 0.0  ;;  %v3056_v54 = vsel %vm527_vm0, %v3936_v6, 0.0  ;;  %v699_v16 = vsel %vm527_vm0, %v3937_v33, 0.0  ;;  %v3940_v17 = vunpack.c.h.bf16 %v3938_v58 }
  0x78   :  { %v3064_v27 = vsel %vm527_vm0, %v3939_v45, 0.0  ;;  %v3942_v18 = vunpack.c.l.bf16 %v3941_v32  ;;  %v3943_v24 = vunpack.c.h.bf16 %v3934_v7  ;;  %v3944_v52 = vunpack.c.h.bf16 %v3931_v55 }
  0x79   :  { %v3069_v10 = vsel %vm527_vm0, %v3940_v17, 0.0  ;;  %v3947_v43 = vunpack.c.l.bf16 %v3946_v30  ;;  %v694_v58 = vadd.f32 %v693_v28, %v692_v38  ;;  %v824_v45 = vadd.f32 %v823_v23, %v822_v51 }
  0x7a   :  { %v762_v34 = vsel %vm527_vm0, %v3942_v18, 0.0  ;;  %v825_v6 = vsel %vm527_vm0, %v3943_v24, 0.0  ;;  %v3080_v36 = vsel %vm527_vm0, %v3944_v52, 0.0  ;;  %v570_v17 = vadd.f32 %v2884_v35, %v568_v11  ;;  %v3948_v18 = vld [vmem:[#allocation11_spill] sm:$0xff] }
  0x7b   :  { %3945 = vst [vmem:[#allocation9_spill] sm:$0xff] %v3080_v36  ;;  %v3085_v33 = vsel %vm527_vm0, %v3947_v43, 0.0  ;;  %v633_v15 = vadd.f32 %v632_v21, %v631_v60  ;;  %v3949_v63 = vunpack.c.l.bf16 %v3948_v18  ;;  %v3950_v24 = vld [vmem:[#allocation27_spill] sm:$0xff]  ;;  %v763_v44 = vadd.f32 %v762_v34, %v761_v4  ;;  %v3952_v36 = vld [vmem:[#allocation37_spill] sm:$0xff] }
  0x7c   :  { %v3951_v55 = vunpack.c.l.bf16 %v3950_v24  ;;  %v826_v26 = vadd.f32 %v825_v6, %v824_v45  ;;  %v3953_v31 = vunpack.c.l.bf16 %v3952_v36  ;;  %v3954_v28 = vunpack.c.h.bf16 %v3952_v36 }
  0x7d   :  { %v3091_v7 = vsel %vm527_vm0, %v3949_v63, 0.0  ;;  %v3955_v21 = vunpack.c.h.bf16 %v3948_v18  ;;  %v3956_v63 = vld [vmem:[#allocation12_spill] sm:$0xff]  ;;  %v3958_v23 = vunpack.c.h.bf16 %v3941_v32  ;;  %v696_v34 = vadd.f32 %v695_v56, %v694_v58 }
  0x7e   :  { %v827_v52 = vsel %vm527_vm0, %v3951_v55, 0.0  ;;  %v873_v43 = vsel %vm527_vm0, %v3953_v31, 0.0  ;;  %v874_v35 = vsel %vm527_vm0, %v3954_v28, 0.0  ;;  %v3957_v11 = vunpack.c.l.bf16 %v3956_v63 }
  0x7f   :  { %v3105_v38 = vsel %vm527_vm0, %v3955_v21, 0.0  ;;  %v764_v4 = vsel %vm527_vm0, %v3958_v23, 0.0  ;;  %v3959_v31 = vunpack.c.h.bf16 %v3950_v24  ;;  %v3960_v6 = vunpack.c.h.bf16 %v3956_v63  ;;  %v3961_v21 = vld [vmem:[#allocation28_spill] sm:$0xff] }
  0x80   :  { %v3110_v60 = vsel %vm527_vm0, %v3957_v11, 0.0  ;;  %v828_v45 = vadd.f32 %v827_v52, %v826_v26  ;;  %v875_v18 = vadd.f32 %v874_v35, %v873_v43  ;;  %v572_v55 = vadd.f32 %v2901_v47, %v570_v17  ;;  %v3965_v43 = vld [vmem:[#allocation18_spill] sm:$0xff] }
  0x81   :  { %v829_v51 = vsel %vm527_vm0, %v3959_v31, 0.0  ;;  %v3121_v36 = vsel %vm527_vm0, %v3960_v6, 0.0  ;;  %v635_v28 = vadd.f32 %v2943_v48, %v633_v15  ;;  %v3962_v32 = vunpack.c.l.bf16 %v3961_v21  ;;  %v3969_v6 = vld [vmem:[#allocation38_spill] sm:$0xff] }
  0x82   :  { %v3963_v24 = vunpack.c.l.bf16 %v2404_v62  ;;  %v3964_v56 = vunpack.c.h.bf16 %v3946_v30  ;;  %v765_v63 = vadd.f32 %v764_v4, %v763_v44  ;;  %v830_v26 = vadd.f32 %v829_v51, %v828_v45  ;;  %v3971_v44 = vld [vmem:[#allocation13_spill] sm:$0xff] }
  0x83   :  { %v831_v11 = vsel %vm527_vm0, %v3962_v32, 0.0  ;;  %v3966_v47 = vunpack.c.l.bf16 %v3965_v43  ;;  %v3967_v48 = vunpack.c.h.bf16 %v3961_v21  ;;  %v3968_v35 = vunpack.c.h.bf16 %v2404_v62 }
  0x84   :  { %v876_v23 = vsel %vm527_vm0, %v3963_v24, 0.0  ;;  %v3134_v58 = vsel %vm527_vm0, %v3964_v56, 0.0  ;;  %v3970_v30 = vunpack.c.l.bf16 %v3969_v6  ;;  %v698_v24 = vadd.f32 %v697_v20, %v696_v34  ;;  %v3975_v34 = vld [vmem:[#allocation7_spill] sm:$0xff] }
  0x85   :  { %v877_v52 = vadd.f32 %v876_v23, %v875_v18  ;;  %v766_v15 = vsel %vm527_vm0, %v3966_v47, 0.0  ;;  %v833_v17 = vsel %vm527_vm0, %v3967_v48, 0.0  ;;  %v878_v31 = vsel %vm527_vm0, %v3968_v35, 0.0 }
  0x86   :  { %v880_v32 = vsel %vm527_vm0, %v3970_v30, 0.0  ;;  %v3972_v4 = vunpack.c.l.bf16 %v3971_v44  ;;  %v832_v45 = vadd.f32 %v831_v11, %v830_v26  ;;  %v574_v21 = vadd.f32 %v2909_v3, %v572_v55  ;;  %v3977_v3 = vld [vmem:[#allocation14_spill] sm:$0xff] }
  0x87   :  { %v879_v18 = vadd.f32 %v878_v31, %v877_v52  ;;  %v637_v23 = vadd.f32 %v2948_v25, %v635_v28  ;;  %v3973_v62 = vunpack.c.h.bf16 %v3971_v44  ;;  %v3974_v47 = vunpack.c.h.bf16 %v3969_v6  ;;  %v3980_v6 = vld [vmem:[#allocation29_spill] sm:$0xff] }
  0x88   :  { %v3151_v51 = vsel %vm527_vm0, %v3972_v4, 0.0  ;;  %v3976_v48 = vunpack.c.l.bf16 %v3975_v34  ;;  %v767_v11 = vadd.f32 %v766_v15, %v765_v63  ;;  %v834_v26 = vadd.f32 %v833_v17, %v832_v45  ;;  %v3982_v4 = vld [vmem:[#allocation39_spill] sm:$0xff] }
  0x89   :  { %v3158_v56 = vsel %vm527_vm0, %v3973_v62, 0.0  ;;  %v882_v20 = vsel %vm527_vm0, %v3974_v47, 0.0  ;;  %v881_v52 = vadd.f32 %v880_v32, %v879_v18  ;;  %v3978_v55 = vunpack.c.l.bf16 %v3977_v3 }
  0x8a   :  { %v3166_v35 = vsel %vm527_vm0, %v3976_v48, 0.0  ;;  %v3979_v28 = vunpack.c.h.bf16 %v3965_v43  ;;  %v3981_v30 = vunpack.c.l.bf16 %v3980_v6  ;;  %v3983_v62 = vunpack.c.l.bf16 %v3982_v4 }
  0x8b   :  { %v3171_v25 = vsel %vm527_vm0, %v3978_v55, 0.0  ;;  %v3984_v63 = vunpack.c.h.bf16 %v3975_v34  ;;  %v700_v17 = vadd.f32 %v699_v16, %v698_v24  ;;  %v3986_v32 = vunpack.c.h.bf16 %v3977_v3  ;;  %v3987_v55 = vld [vmem:[#allocation15_spill] sm:$0xff] }
  0x8c   :  { %v768_v31 = vsel %vm527_vm0, %v3979_v28, 0.0  ;;  %v835_v44 = vsel %vm527_vm0, %v3981_v30, 0.0  ;;  %v884_v47 = vsel %vm527_vm0, %v3983_v62, 0.0  ;;  %v883_v45 = vadd.f32 %v882_v20, %v881_v52 }
  0x8d   :  { %v3185_v15 = vsel %vm527_vm0, %v3984_v63, 0.0  ;;  %v3190_v43 = vsel %vm527_vm0, %v3986_v32, 0.0  ;;  %v576_v18 = vadd.f32 %v2935_v53, %v574_v21  ;;  %v639_v48 = vadd.f32 %v2964_v14, %v637_v23  ;;  %v3991_v53 = vld [vmem:[#allocation16_spill] sm:$0xff]  ;;  %v3994_v23 = vld [vmem:[#allocation19_spill] sm:$0xff] }
  0x8e   :  { %3985 = vst [vmem:[#allocation5_spill] sm:$0xff] %v3185_v15  ;;  %v3988_v28 = vunpack.c.l.bf16 %v3987_v55  ;;  %v3989_v34 = vunpack.c.h.bf16 %v3982_v4  ;;  %v3990_v16 = vunpack.c.h.bf16 %v3987_v55  ;;  %v769_v3 = vadd.f32 %v768_v31, %v767_v11  ;;  %v3997_v55 = vld [vmem:[#allocation40_spill] sm:$0xff] }
  0x8f   :  { %v836_v20 = vadd.f32 %v835_v44, %v834_v26  ;;  %v885_v52 = vadd.f32 %v884_v47, %v883_v45  ;;  %v3992_v21 = vunpack.c.l.bf16 %v3991_v53  ;;  %v3995_v63 = vunpack.c.l.bf16 %v3994_v23 }
  0x90   :  { %v3197_v30 = vsel %vm527_vm0, %v3988_v28, 0.0  ;;  %v886_v62 = vsel %vm527_vm0, %v3989_v34, 0.0  ;;  %v3205_v24 = vsel %vm527_vm0, %v3990_v16, 0.0  ;;  %v3996_v4 = vunpack.c.h.bf16 %v3980_v6 }
  0x91   :  { %v3210_v14 = vsel %vm527_vm0, %v3992_v21, 0.0  ;;  %v770_v32 = vsel %vm527_vm0, %v3995_v63, 0.0  ;;  %v3998_v34 = vunpack.c.l.bf16 %v3997_v55  ;;  %v702_v11 = vadd.f32 %v3064_v27, %v700_v17  ;;  %v4002_v63 = vld [vmem:[#allocation20_spill] sm:$0xff] }
  0x92   :  { %3993 = vst [vmem:[#allocation26_spill] sm:$0xff] %v3210_v14  ;;  %v837_v28 = vsel %vm527_vm0, %v3996_v4, 0.0  ;;  %v3999_v26 = vunpack.c.h.bf16 %v3991_v53  ;;  %v4001_v44 = vunpack.c.h.bf16 %v3994_v23  ;;  %v887_v45 = vadd.f32 %v886_v62, %v885_v52  ;;  %v4006_v62 = vld [vmem:[#allocation21_spill] sm:$0xff] }
  0x93   :  { %v888_v16 = vsel %vm527_vm0, %v3998_v34, 0.0  ;;  %v578_v6 = vadd.f32 %v2959_v50, %v576_v18  ;;  %v641_v21 = vadd.f32 %v2980_v5, %v639_v48  ;;  %v4003_v4 = vunpack.c.l.bf16 %v4002_v63  ;;  %v4009_v48 = vld [vmem:[#allocation30_spill] sm:$0xff] }
  0x94   :  { %v3225_v31 = vsel %vm527_vm0, %v3999_v26, 0.0  ;;  %v772_v47 = vsel %vm527_vm0, %v4001_v44, 0.0  ;;  %v4004_v27 = vunpack.c.h.bf16 %v3997_v55  ;;  %v771_v53 = vadd.f32 %v770_v32, %v769_v3  ;;  %v4011_v3 = vld [vmem:[#allocation41_spill] sm:$0xff] }
  0x95   :  { %4000 = vst [vmem:[#allocation10_spill] sm:$0xff] %v3225_v31  ;;  %v774_v34 = vsel %vm527_vm0, %v4003_v4, 0.0  ;;  %v4005_v26 = vunpack.c.h.bf16 %v4002_v63  ;;  %v838_v31 = vadd.f32 %v837_v28, %v836_v20  ;;  %v889_v44 = vadd.f32 %v888_v16, %v887_v45  ;;  %v4013_v28 = vld [vmem:[#allocation22_spill] sm:$0xff] }
  0x96   :  { %v890_v17 = vsel %vm527_vm0, %v4004_v27, 0.0  ;;  %v4007_v52 = vunpack.c.l.bf16 %v4006_v62  ;;  %v4008_v5 = vunpack.c.h.bf16 %v4006_v62  ;;  %v4010_v55 = vunpack.c.l.bf16 %v4009_v48 }
  0x97   :  { %v776_v23 = vsel %vm527_vm0, %v4005_v26, 0.0  ;;  %v4012_v32 = vunpack.c.l.bf16 %v4011_v3  ;;  %v704_v20 = vadd.f32 %v3069_v10, %v702_v11  ;;  %v4014_v16 = vunpack.c.l.bf16 %v4013_v28 }
  0x98   :  { %v778_v50 = vsel %vm527_vm0, %v4007_v52, 0.0  ;;  %v3247_v18 = vsel %vm527_vm0, %v4008_v5, 0.0  ;;  %v839_v4 = vsel %vm527_vm0, %v4010_v55, 0.0  ;;  %v891_v27 = vadd.f32 %v890_v17, %v889_v44 }
  0x99   :  { %v892_v63 = vsel %vm527_vm0, %v4012_v32, 0.0  ;;  %v3259_v45 = vsel %vm527_vm0, %v4014_v16, 0.0  ;;  %v4015_v26 = vunpack.c.l.bf16 %v2549_v40  ;;  %v580_v52 = vadd.f32 %v2975_v9, %v578_v6 }
  0x9a   :  { %v643_v5 = vadd.f32 %v2990_v22, %v641_v21  ;;  %v4016_v55 = vunpack.c.h.bf16 %v4011_v3  ;;  %v4017_v10 = vunpack.c.h.bf16 %v2549_v40  ;;  %v773_v15 = vadd.f32 %v772_v47, %v771_v53  ;;  %v4021_v21 = vld [vmem:[#allocation42_spill] sm:$0xff]  ;;  %v4023_v53 = vld [vmem:[#allocation23_spill] sm:$0xff] }
  0x9b   :  { %v942_v62 = vsel %vm527_vm0, %v4015_v26, 0.0  ;;  %v840_v16 = vadd.f32 %v839_v4, %v838_v31  ;;  %v893_v14 = vadd.f32 %v892_v63, %v891_v27  ;;  %v4018_v17 = vunpack.c.l.bf16 %v2554_v12 }
  0x9c   :  { %v894_v32 = vsel %vm527_vm0, %v4016_v55, 0.0  ;;  %v943_v11 = vsel %vm527_vm0, %v4017_v10, 0.0  ;;  %v4019_v26 = vunpack.c.h.bf16 %v4013_v28  ;;  %v4020_v22 = vunpack.c.h.bf16 %v4009_v48 }
  0x9d   :  { %v945_v44 = vsel %vm527_vm0, %v4018_v17, 0.0  ;;  %v4022_v40 = vunpack.c.l.bf16 %v4021_v21  ;;  %v944_v47 = vadd.f32 %v943_v11, %v942_v62  ;;  %v706_v31 = vadd.f32 %v3091_v7, %v704_v20 }
  0x9e   :  { %v3278_v9 = vsel %vm527_vm0, %v4019_v26, 0.0  ;;  %v841_v6 = vsel %vm527_vm0, %v4020_v22, 0.0  ;;  %v4024_v4 = vunpack.c.l.bf16 %v4023_v53  ;;  %v895_v28 = vadd.f32 %v894_v32, %v893_v14 }
  0x9f   :  { %v896_v3 = vsel %vm527_vm0, %v4022_v40, 0.0  ;;  %v4025_v27 = vunpack.c.h.bf16 %v2554_v12  ;;  %v582_v48 = vadd.f32 %v2985_v2, %v580_v52  ;;  %v645_v10 = vadd.f32 %v3006_v42, %v643_v5  ;;  %v4029_v2 = vld [vmem:[#allocation31_spill] sm:$0xff] }
  0xa0   :  { %v3290_v63 = vsel %vm527_vm0, %v4024_v4, 0.0  ;;  %v4026_v17 = vunpack.c.h.bf16 %v4021_v21  ;;  %v946_v11 = vadd.f32 %v945_v44, %v944_v47  ;;  %v775_v7 = vadd.f32 %v774_v34, %v773_v15  ;;  %v4031_v5 = vld [vmem:[#allocation43_spill] sm:$0xff] }
  0xa1   :  { %v947_v55 = vsel %vm527_vm0, %v4025_v27, 0.0  ;;  %v842_v20 = vadd.f32 %v841_v6, %v840_v16  ;;  %v897_v26 = vadd.f32 %v896_v3, %v895_v28  ;;  %v4027_v22 = vunpack.c.l.bf16 %v2575_v46  ;;  %v4033_v16 = vld [vmem:[#allocation24_spill] sm:$0xff] }
  0xa2   :  { %v898_v62 = vsel %vm527_vm0, %v4026_v17, 0.0  ;;  %v4028_v12 = vunpack.c.h.bf16 %v4023_v53  ;;  %v4030_v52 = vunpack.c.l.bf16 %v4029_v2  ;;  %v4032_v21 = vunpack.c.l.bf16 %v4031_v5 }
  0xa3   :  { %v949_v14 = vsel %vm527_vm0, %v4027_v22, 0.0  ;;  %v948_v15 = vadd.f32 %v947_v55, %v946_v11  ;;  %v708_v34 = vadd.f32 %v3105_v38, %v706_v31  ;;  %v4034_v6 = vunpack.c.l.bf16 %v4033_v16 }
  0xa4   :  { %v3306_v32 = vsel %vm527_vm0, %v4028_v12, 0.0  ;;  %v843_v42 = vsel %vm527_vm0, %v4030_v52, 0.0  ;;  %v900_v44 = vsel %vm527_vm0, %v4032_v21, 0.0  ;;  %v899_v3 = vadd.f32 %v898_v62, %v897_v26 }
  0xa5   :  { %v3318_v40 = vsel %vm527_vm0, %v4034_v6, 0.0  ;;  %v4035_v47 = vunpack.c.h.bf16 %v2575_v46  ;;  %v3324_v4 = vadd.f32 %v3001_v29, %v582_v48  ;;  %v647_v28 = vadd.f32 %v3022_v59, %v645_v10  ;;  %v4040_v48 = vld [vmem:[#allocation44_spill] sm:$0xff] }
  0xa6   :  { %v4036_v27 = vunpack.c.h.bf16 %v4031_v5  ;;  %v950_v38 = vadd.f32 %v949_v14, %v948_v15  ;;  %v777_v31 = vadd.f32 %v776_v23, %v775_v7  ;;  %v844_v17 = vadd.f32 %v843_v42, %v842_v20  ;;  %v4042_v20 = vld [vmem:[#allocation25_spill] sm:$0xff] }
  0xa7   :  { %v951_v53 = vsel %vm527_vm0, %v4035_v47, 0.0  ;;  %v901_v11 = vadd.f32 %v900_v44, %v899_v3  ;;  %v4037_v22 = vunpack.c.l.bf16 %v2583_v0  ;;  %v4038_v46 = vunpack.c.h.bf16 %v4033_v16  ;;  %v4045_v44 = vld [vmem:[#allocation32_spill] sm:$0xff] }
  0xa8   :  { %v902_v55 = vsel %vm527_vm0, %v4036_v27, 0.0  ;;  %v4039_v29 = vunpack.c.h.bf16 %v4029_v2  ;;  %v4041_v10 = vunpack.c.l.bf16 %v4040_v48  ;;  %v952_v23 = vadd.f32 %v951_v53, %v950_v38 }
  0xa9   :  { %v953_v62 = vsel %vm527_vm0, %v4037_v22, 0.0  ;;  %v3336_v26 = vsel %vm527_vm0, %v4038_v46, 0.0  ;;  %v710_v7 = vadd.f32 %v3110_v60, %v708_v34  ;;  %v4043_v12 = vunpack.c.l.bf16 %v4042_v20 }
  0xaa   :  { %v845_v59 = vsel %vm527_vm0, %v4039_v29, 0.0  ;;  %v904_v14 = vsel %vm527_vm0, %v4041_v10, 0.0  ;;  %v903_v42 = vadd.f32 %v902_v55, %v901_v11  ;;  %v4044_v5 = vunpack.c.h.bf16 %v2583_v0  ;;  %v4049_v55 = vld [vmem:[#allocation45_spill] sm:$0xff] }
  0xab   :  { %v3348_v52 = vsel %vm527_vm0, %v4043_v12, 0.0  ;;  %v3354_v2 = vadd.f32 %v3027_v8, %v647_v28  ;;  %v4046_v15 = vunpack.c.l.bf16 %v4045_v44  ;;  %v4047_v6 = vunpack.c.h.bf16 %v4040_v48 }
  0xac   :  { %v955_v21 = vsel %vm527_vm0, %v4044_v5, 0.0  ;;  %v954_v34 = vadd.f32 %v953_v62, %v952_v23  ;;  %v779_v3 = vadd.f32 %v778_v50, %v777_v31  ;;  %v846_v47 = vadd.f32 %v845_v59, %v844_v17  ;;  %v4057_v5 = vld [vmem:[#allocation52_spill] sm:$0xff] }
  0xad   :  { %v847_v16 = vsel %vm527_vm0, %v4046_v15, 0.0  ;;  %v906_v60 = vsel %vm527_vm0, %v4047_v6, 0.0  ;;  %v905_v53 = vadd.f32 %v904_v14, %v903_v42  ;;  %v4048_v27 = vunpack.c.l.bf16 %v2588_v41 }
  0xae   :  { %v4050_v38 = vunpack.c.l.bf16 %v4049_v55  ;;  %v956_v28 = vadd.f32 %v955_v21, %v954_v34  ;;  %v4051_v11 = vunpack.c.l.bf16 %v2692_v19  ;;  %v4052_v46 = vunpack.c.h.bf16 %v2692_v19 }
  0xaf   :  { %v957_v0 = vsel %vm527_vm0, %v4048_v27, 0.0  ;;  %v712_v50 = vadd.f32 %v3121_v36, %v710_v7  ;;  %v907_v31 = vadd.f32 %v906_v60, %v905_v53  ;;  %v4053_v17 = vunpack.c.h.bf16 %v2588_v41  ;;  %v4060_v60 = vld [vmem:[#allocation46_spill] sm:$0xff] }
  0xb0   :  { %v908_v8 = vsel %vm527_vm0, %v4050_v38, 0.0  ;;  %v1011_v22 = vsel %vm527_vm0, %v4051_v11, 0.0  ;;  %v1012_v62 = vsel %vm527_vm0, %v4052_v46, 0.0  ;;  %v4054_v59 = vunpack.c.l.bf16 %v2710_v13 }
  0xb1   :  { %v959_v29 = vsel %vm527_vm0, %v4053_v17, 0.0  ;;  %v4055_v10 = vunpack.c.h.bf16 %v4045_v44  ;;  %v4056_v23 = vunpack.c.h.bf16 %v4049_v55  ;;  %v958_v12 = vadd.f32 %v957_v0, %v956_v28  ;;  %v4064_v28 = vld [vmem:[#allocation33_spill] sm:$0xff] }
  0xb2   :  { %v1014_v48 = vsel %vm527_vm0, %v4054_v59, 0.0  ;;  %v1013_v42 = vadd.f32 %v1012_v62, %v1011_v22  ;;  %v848_v36 = vadd.f32 %v847_v16, %v846_v47  ;;  %v909_v7 = vadd.f32 %v908_v8, %v907_v31 }
  0xb3   :  { %v849_v14 = vsel %vm527_vm0, %v4055_v10, 0.0  ;;  %v910_v19 = vsel %vm527_vm0, %v4056_v23, 0.0  ;;  %v4058_v41 = vunpack.c.l.bf16 %v4057_v5  ;;  %v4059_v15 = vunpack.c.h.bf16 %v2710_v13  ;;  %v4069_v10 = vld [vmem:[#allocation47_spill] sm:$0xff] }
  0xb4   :  { %v781_v44 = vadd.f32 %v3247_v18, %v779_v3  ;;  %v4061_v34 = vunpack.c.l.bf16 %v4060_v60  ;;  %v960_v27 = vadd.f32 %v959_v29, %v958_v12  ;;  %v1015_v55 = vadd.f32 %v1014_v48, %v1013_v42 }
  0xb5   :  { %v961_v21 = vsel %vm527_vm0, %v4058_v41, 0.0  ;;  %v1016_v6 = vsel %vm527_vm0, %v4059_v15, 0.0  ;;  %v714_v0 = vadd.f32 %v3151_v51, %v712_v50  ;;  %v911_v16 = vadd.f32 %v910_v19, %v909_v7 }
  0xb6   :  { %v912_v53 = vsel %vm527_vm0, %v4061_v34, 0.0  ;;  %v4062_v47 = vunpack.c.h.bf16 %v4057_v5  ;;  %v4063_v8 = vunpack.c.l.bf16 %v2715_v61  ;;  %v4065_v11 = vunpack.c.l.bf16 %v4064_v28 }
  0xb7   :  { %v4066_v3 = vunpack.c.h.bf16 %v4060_v60  ;;  %v962_v46 = vadd.f32 %v961_v21, %v960_v27  ;;  %v1017_v62 = vadd.f32 %v1016_v6, %v1015_v55  ;;  %v850_v51 = vadd.f32 %v849_v14, %v848_v36 }
  0xb8   :  { %v963_v38 = vsel %vm527_vm0, %v4062_v47, 0.0  ;;  %v1018_v13 = vsel %vm527_vm0, %v4063_v8, 0.0  ;;  %v851_v18 = vsel %vm527_vm0, %v4065_v11, 0.0  ;;  %v913_v50 = vadd.f32 %v912_v53, %v911_v16  ;;  %v4075_v53 = vld [vmem:[#allocation53_spill] sm:$0xff]  ;;  %v4078_v47 = vld [vmem:[#allocation48_spill] sm:$0xff] }
  0xb9   :  { %v914_v22 = vsel %vm527_vm0, %v4066_v3, 0.0  ;;  %v4067_v31 = vunpack.c.l.bf16 %v2604_v1  ;;  %v4068_v29 = vunpack.c.h.bf16 %v2715_v61  ;;  %v783_v48 = vadd.f32 %v3259_v45, %v781_v44 }
  0xba   :  { %v4070_v23 = vunpack.c.l.bf16 %v4069_v10  ;;  %v964_v12 = vadd.f32 %v963_v38, %v962_v46  ;;  %v1019_v42 = vadd.f32 %v1018_v13, %v1017_v62  ;;  %v716_v7 = vadd.f32 %v3158_v56, %v714_v0 }
  0xbb   :  { %v965_v17 = vsel %vm527_vm0, %v4067_v31, 0.0  ;;  %v1020_v59 = vsel %vm527_vm0, %v4068_v29, 0.0  ;;  %v915_v14 = vadd.f32 %v914_v22, %v913_v50  ;;  %v4071_v36 = vunpack.c.h.bf16 %v2604_v1  ;;  %v4083_v29 = vld [vmem:[#allocation54_spill] sm:$0xff] }
  0xbc   :  { %v916_v19 = vsel %vm527_vm0, %v4070_v23, 0.0  ;;  %v4072_v41 = vunpack.c.l.bf16 %v2737_v39  ;;  %v4073_v21 = vunpack.c.h.bf16 %v4064_v28  ;;  %v4074_v15 = vunpack.c.h.bf16 %v4069_v10 }
  0xbd   :  { %v967_v5 = vsel %vm527_vm0, %v4071_v36, 0.0  ;;  %v966_v44 = vadd.f32 %v965_v17, %v964_v12  ;;  %v1021_v60 = vadd.f32 %v1020_v59, %v1019_v42  ;;  %v852_v56 = vadd.f32 %v851_v18, %v850_v51  ;;  %v4086_v12 = vld [vmem:[#allocation34_spill] sm:$0xff] }
  0xbe   :  { %v1022_v61 = vsel %vm527_vm0, %v4072_v41, 0.0  ;;  %v853_v45 = vsel %vm527_vm0, %v4073_v21, 0.0  ;;  %v918_v6 = vsel %vm527_vm0, %v4074_v15, 0.0  ;;  %v917_v34 = vadd.f32 %v916_v19, %v915_v14 }
  0xbf   :  { %v4076_v1 = vunpack.c.l.bf16 %v4075_v53  ;;  %v4077_v55 = vunpack.c.h.bf16 %v2737_v39  ;;  %v785_v16 = vadd.f32 %v3278_v9, %v783_v48  ;;  %v4079_v38 = vunpack.c.l.bf16 %v4078_v47 }
  0xc0   :  { %v968_v13 = vadd.f32 %v967_v5, %v966_v44  ;;  %v1023_v28 = vadd.f32 %v1022_v61, %v1021_v60  ;;  %v718_v11 = vadd.f32 %v3171_v25, %v716_v7  ;;  %v919_v18 = vadd.f32 %v918_v6, %v917_v34  ;;  %v4091_v60 = vld [vmem:[#allocation49_spill] sm:$0xff] }
  0xc1   :  { %v969_v27 = vsel %vm527_vm0, %v4076_v1, 0.0  ;;  %v1024_v0 = vsel %vm527_vm0, %v4077_v55, 0.0  ;;  %v920_v8 = vsel %vm527_vm0, %v4079_v38, 0.0  ;;  %v4080_v3 = vunpack.c.h.bf16 %v4075_v53 }
  0xc2   :  { %v4081_v46 = vunpack.c.l.bf16 %v2746_v49  ;;  %v651_v9 = vadd.f32 %v3056_v54, %v3354_v2  ;;  %v4082_v62 = vunpack.c.h.bf16 %v4078_v47  ;;  %v970_v50 = vadd.f32 %v969_v27, %v968_v13 }
  0xc3   :  { %v971_v22 = vsel %vm527_vm0, %v4080_v3, 0.0  ;;  %v1025_v31 = vadd.f32 %v1024_v0, %v1023_v28  ;;  %v854_v17 = vadd.f32 %v853_v45, %v852_v56  ;;  %v921_v25 = vadd.f32 %v920_v8, %v919_v18 }
  0xc4   :  { %v1026_v39 = vsel %vm527_vm0, %v4081_v46, 0.0  ;;  %v922_v51 = vsel %vm527_vm0, %v4082_v62, 0.0  ;;  %v4084_v59 = vunpack.c.l.bf16 %v4083_v29  ;;  %v4085_v10 = vunpack.c.h.bf16 %v2746_v49  ;;  %v4089_v49 = vld [vmem:[#allocation62_spill] sm:$0xff] }
  0xc5   :  { %v787_v19 = vadd.f32 %v3290_v63, %v785_v16  ;;  %v4087_v54 = vunpack.c.l.bf16 %v4086_v12  ;;  %v972_v42 = vadd.f32 %v971_v22, %v970_v50  ;;  %v1027_v7 = vadd.f32 %v1026_v39, %v1025_v31 }
  0xc6   :  { %v973_v48 = vsel %vm527_vm0, %v4084_v59, 0.0  ;;  %v1028_v23 = vsel %vm527_vm0, %v4085_v10, 0.0  ;;  %v586_v14 = vadd.f32 %v3017_v37, %v3324_v4  ;;  %v720_v36 = vadd.f32 %v3190_v43, %v718_v11  ;;  %v4093_v4 = vld [vmem:[#allocation55_spill] sm:$0xff]  ;;  %v4106_v10 = vld [vmem:[#allocation8_spill] sm:$0xff] }
  0xc7   :  { %v855_v2 = vsel %vm527_vm0, %v4087_v54, 0.0  ;;  %v4088_v5 = vunpack.c.h.bf16 %v4083_v29  ;;  %v4090_v61 = vunpack.c.l.bf16 %v4089_v49  ;;  %v653_v63 = vadd.f32 %v3085_v33, %v651_v9  ;;  %v4101_v9 = vld [vmem:[#allocation56_spill] sm:$0xff] }
  0xc8   :  { %v923_v45 = vadd.f32 %v922_v51, %v921_v25  ;;  %v974_v15 = vadd.f32 %v973_v48, %v972_v42  ;;  %v1029_v6 = vadd.f32 %v1028_v23, %v1027_v7  ;;  %v856_v44 = vadd.f32 %v855_v2, %v854_v17  ;;  %v4104_v25 = vld [vmem:[#allocation35_spill] sm:$0xff] }
  0xc9   :  { %v975_v41 = vsel %vm527_vm0, %v4088_v5, 0.0  ;;  %v1030_v21 = vsel %vm527_vm0, %v4090_v61, 0.0  ;;  %v4092_v56 = vunpack.c.l.bf16 %v4091_v60  ;;  %v4094_v43 = vunpack.c.l.bf16 %v4093_v4  ;;  %v4108_v2 = vld [vmem:[#allocation63_spill] sm:$0xff] }
  0xca   :  { %v4095_v53 = vunpack.c.h.bf16 %v4089_v49  ;;  %v789_v27 = vadd.f32 %v3306_v32, %v787_v19  ;;  %v4096_v33 = vunpack.c.h.bf16 %v4086_v12  ;;  %v976_v0 = vadd.f32 %v975_v41, %v974_v15  ;;  %v4110_v49 = vld [vmem:[#allocation50_spill] sm:$0xff] }
  0xcb   :  { %v924_v37 = vsel %vm527_vm0, %v4092_v56, 0.0  ;;  %v977_v34 = vsel %vm527_vm0, %v4094_v43, 0.0  ;;  %v1031_v16 = vadd.f32 %v1030_v21, %v1029_v6  ;;  %v722_v47 = vadd.f32 %v3197_v30, %v720_v36  ;;  %v4112_v21 = vld [vmem:[#allocation57_spill] sm:$0xff]  ;;  %v4117_v43 = vld [vmem:[#allocation26_spill] sm:$0xff] }
  0xcc   :  { %v1032_v1 = vsel %vm527_vm0, %v4095_v53, 0.0  ;;  %v857_v55 = vsel %vm527_vm0, %v4096_v33, 0.0  ;;  %v4097_v38 = vunpack.c.h.bf16 %v4042_v20  ;;  %v4098_v13 = vunpack.c.h.bf16 %v4093_v4 }
  0xcd   :  { %v4099_v11 = vunpack.c.l.bf16 %v2775_v57  ;;  %v655_v18 = vadd.f32 %v3134_v58, %v653_v63  ;;  %v925_v3 = vadd.f32 %v924_v37, %v923_v45  ;;  %v978_v22 = vadd.f32 %v977_v34, %v976_v0  ;;  %v4116_v37 = vld [vmem:[#allocation9_spill] sm:$0xff] }
  0xce   :  { %v796_v8 = vsel %vm527_vm0, %v4097_v38, 0.0  ;;  %v979_v28 = vsel %vm527_vm0, %v4098_v13, 0.0  ;;  %v1033_v46 = vadd.f32 %v1032_v1, %v1031_v16  ;;  %v858_v39 = vadd.f32 %v857_v55, %v856_v44  ;;  %v4121_v0 = vld [vmem:[#allocation5_spill] sm:$0xff] }
  0xcf   :  { %v1034_v32 = vsel %vm527_vm0, %v4099_v11, 0.0  ;;  %v4100_v30 = vunpack.c.h.bf16 %v4091_v60  ;;  %v4102_v62 = vunpack.c.l.bf16 %v4101_v9  ;;  %v4103_v50 = vunpack.c.h.bf16 %v2775_v57 }
  0xd0   :  { %v791_v17 = vadd.f32 %v3318_v40, %v789_v27  ;;  %v4105_v58 = vunpack.c.l.bf16 %v4104_v25  ;;  %v980_v59 = vadd.f32 %v979_v28, %v978_v22  ;;  %v1035_v48 = vadd.f32 %v1034_v32, %v1033_v46  ;;  %v4119_v27 = vld [vmem:[#allocation64_spill] sm:$0xff]  ;;  %v4123_v32 = vld [vmem:[#allocation58_spill] sm:$0xff] }
  0xd1   :  { %v926_v20 = vsel %vm527_vm0, %v4100_v30, 0.0  ;;  %v981_v51 = vsel %vm527_vm0, %v4102_v62, 0.0  ;;  %v1036_v31 = vsel %vm527_vm0, %v4103_v50, 0.0  ;;  %v588_v23 = vadd.f32 %v4106_v10, %v586_v14  ;;  %v4126_v30 = vld [vmem:[#allocation36_spill] sm:$0xff] }
  0xd2   :  { %v859_v29 = vsel %vm527_vm0, %v4105_v58, 0.0  ;;  %v724_v19 = vadd.f32 %v3205_v24, %v722_v47  ;;  %v4107_v12 = vunpack.c.h.bf16 %v4101_v9  ;;  %v4109_v57 = vunpack.c.l.bf16 %v4108_v2 }
  0xd3   :  { %v657_v40 = vadd.f32 %v3166_v35, %v655_v18  ;;  %v927_v7 = vadd.f32 %v926_v20, %v925_v3  ;;  %v982_v36 = vadd.f32 %v981_v51, %v980_v59  ;;  %v1037_v5 = vadd.f32 %v1036_v31, %v1035_v48  ;;  %v4128_v31 = vld [vmem:[#allocation10_spill] sm:$0xff] }
  0xd4   :  { %v983_v54 = vsel %vm527_vm0, %v4107_v12, 0.0  ;;  %v1038_v42 = vsel %vm527_vm0, %v4109_v57, 0.0  ;;  %v860_v41 = vadd.f32 %v859_v29, %v858_v39  ;;  %v4111_v61 = vunpack.c.l.bf16 %v4110_v49  ;;  %v4130_v29 = vld [vmem:[#allocation65_spill] sm:$0xff] }
  0xd5   :  { %v4113_v24 = vunpack.c.l.bf16 %v4112_v21  ;;  %v4114_v45 = vunpack.c.h.bf16 %v4108_v2  ;;  %v793_v6 = vadd.f32 %v3336_v26, %v791_v17  ;;  %v4115_v35 = vunpack.c.h.bf16 %v4104_v25 }
  0xd6   :  { %v928_v14 = vsel %vm527_vm0, %v4111_v61, 0.0  ;;  %v984_v60 = vadd.f32 %v983_v54, %v982_v36  ;;  %v1039_v56 = vadd.f32 %v1038_v42, %v1037_v5  ;;  %v590_v4 = vadd.f32 %v4116_v37, %v588_v23  ;;  %v4132_v54 = vld [vmem:[#allocation51_spill] sm:$0xff] }
  0xd7   :  { %v985_v63 = vsel %vm527_vm0, %v4113_v24, 0.0  ;;  %v1040_v15 = vsel %vm527_vm0, %v4114_v45, 0.0  ;;  %v861_v44 = vsel %vm527_vm0, %v4115_v35, 0.0  ;;  %v726_v34 = vadd.f32 %v4117_v43, %v724_v19  ;;  %v4134_v42 = vld [vmem:[#allocation59_spill] sm:$0xff] }
  0xd8   :  { %v4118_v53 = vunpack.c.h.bf16 %v4112_v21  ;;  %v4120_v33 = vunpack.c.l.bf16 %v4119_v27  ;;  %v659_v26 = vadd.f32 %v4121_v0, %v657_v40  ;;  %v929_v16 = vadd.f32 %v928_v14, %v927_v7  ;;  %v4145_v0 = vld [vmem:[#allocation68_spill] sm:$0xff] }
  0xd9   :  { %v986_v47 = vadd.f32 %v985_v63, %v984_v60  ;;  %v1041_v38 = vadd.f32 %v1040_v15, %v1039_v56  ;;  %v862_v13 = vadd.f32 %v861_v44, %v860_v41  ;;  %v4122_v28 = vunpack.c.h.bf16 %v4110_v49 }
  0xda   :  { %v987_v1 = vsel %vm527_vm0, %v4118_v53, 0.0  ;;  %v1042_v55 = vsel %vm527_vm0, %v4120_v33, 0.0  ;;  %v4124_v18 = vunpack.c.l.bf16 %v4123_v32  ;;  %v4125_v22 = vunpack.c.h.bf16 %v4119_v27 }
  0xdb   :  { %v930_v11 = vsel %vm527_vm0, %v4122_v28, 0.0  ;;  %v795_v39 = vadd.f32 %v3348_v52, %v793_v6  ;;  %v4127_v20 = vunpack.c.l.bf16 %v4126_v30  ;;  %v988_v62 = vadd.f32 %v987_v1, %v986_v47  ;;  %v4139_v6 = vld [vmem:[#allocation66_spill] sm:$0xff]  ;;  %v4142_v1 = vld [vmem:[#allocation60_spill] sm:$0xff] }
  0xdc   :  { %v989_v3 = vsel %vm527_vm0, %v4124_v18, 0.0  ;;  %v1044_v46 = vsel %vm527_vm0, %v4125_v22, 0.0  ;;  %v1043_v51 = vadd.f32 %v1042_v55, %v1041_v38  ;;  %v591_v50 = vrot.slane %v590_v4, 4 }
  0xdd   :  { %v863_v9 = vsel %vm527_vm0, %v4127_v20, 0.0  ;;  %v728_v17 = vadd.f32 %v4128_v31, %v726_v34  ;;  %v4129_v25 = vunpack.c.h.bf16 %v4123_v32  ;;  %v4131_v59 = vunpack.c.l.bf16 %v4130_v29 }
  0xde   :  { %v660_v10 = vrot.slane %v659_v26, 4  ;;  %v931_v23 = vadd.f32 %v930_v11, %v929_v16  ;;  %v990_v52 = vadd.f32 %v989_v3, %v988_v62  ;;  %v1045_v19 = vadd.f32 %v1044_v46, %v1043_v51  ;;  %v4147_v3 = vld [vmem:[#allocation67_spill] sm:$0xff]  ;;  %v1080_v62 = vld [vmem:[%s3636_s1] sm:$0xf] }
  0xdf   :  { %v991_v58 = vsel %vm527_vm0, %v4129_v25, 0.0  ;;  %v1046_v48 = vsel %vm527_vm0, %v4131_v59, 0.0  ;;  %v864_v12 = vadd.f32 %v863_v9, %v862_v13  ;;  %v4133_v2 = vunpack.c.l.bf16 %v4132_v54  ;;  %v1788_v13 = vld [vmem:[%s3635_s0 + $0x3e8] sm:$0xff]   ;;  %1150 = vmatpush.msk.msra.mxu0 %vm1109_vm1, %v1080_v62 }
  0xe0   :  { %v4135_v40 = vunpack.c.l.bf16 %v4134_v42  ;;  %v4136_v36 = vunpack.c.h.bf16 %v4130_v29  ;;  %v797_v41 = vadd.f32 %v796_v8, %v795_v39  ;;  %v4137_v49 = vunpack.c.h.bf16 %v4126_v30 }
  0xe1   :  { %v932_v57 = vsel %vm527_vm0, %v4133_v2, 0.0  ;;  %v992_v14 = vadd.f32 %v991_v58, %v990_v52  ;;  %v1047_v21 = vadd.f32 %v1046_v48, %v1045_v19  ;;  %v592_v24 = vadd.f32 %v591_v50, %v590_v4  ;;  %v4149_v50 = vld [vmem:[#allocation61_spill] sm:$0xff] }
  0xe2   :  { %v993_v7 = vsel %vm527_vm0, %v4135_v40, 0.0  ;;  %v1048_v5 = vsel %vm527_vm0, %v4136_v36, 0.0  ;;  %v865_v61 = vsel %vm527_vm0, %v4137_v49, 0.0  ;;  %v729_v63 = vrot.slane %v728_v17, 4 }
  0xe3   :  { %v4138_v45 = vunpack.c.h.bf16 %v4134_v42  ;;  %v4140_v35 = vunpack.c.l.bf16 %v4139_v6  ;;  %v661_v60 = vadd.f32 %v660_v10, %v659_v26  ;;  %v933_v56 = vadd.f32 %v932_v57, %v931_v23  ;;  %v1789_v57 = vld [vmem:[%s3635_s0 + $0x3f0] sm:$0xff]  }
  0xe4   :  { %v994_v37 = vadd.f32 %v993_v7, %v992_v14  ;;  %v1049_v8 = vadd.f32 %v1048_v5, %v1047_v21  ;;  %v866_v43 = vadd.f32 %v865_v61, %v864_v12  ;;  %v4141_v34 = vunpack.c.h.bf16 %v4132_v54 }
  0xe5   :  { %v995_v15 = vsel %vm527_vm0, %v4138_v45, 0.0  ;;  %v1050_v44 = vsel %vm527_vm0, %v4140_v35, 0.0  ;;  %v4143_v4 = vunpack.c.l.bf16 %v4142_v1  ;;  %v4144_v33 = vunpack.c.h.bf16 %v4139_v6  ;;  %v1790_v6 = vld [vmem:[%s3635_s0 + $0x3f8] sm:$0xff]  }
  0xe6   :  { %v934_v53 = vsel %vm527_vm0, %v4141_v34, 0.0  ;;  %v1651_v16 = vunpack.c.h.bf16 %v4145_v0  ;;  %v798_v47 = vrot.slane %v797_v41, 4  ;;  %v996_v26 = vadd.f32 %v995_v15, %v994_v37 }
  0xe7   :  { %v997_v27 = vsel %vm527_vm0, %v4143_v4, 0.0  ;;  %v1052_v55 = vsel %vm527_vm0, %v4144_v33, 0.0  ;;  %v1051_v38 = vadd.f32 %v1050_v44, %v1049_v8  ;;  %v593_v28 = vrot.slane %v592_v24, 2 }
  0xe8   :  { %v730_v11 = vadd.f32 %v729_v63, %v728_v17  ;;  %v4146_v32 = vunpack.c.h.bf16 %v4142_v1  ;;  %v4148_v22 = vunpack.c.l.bf16 %v4147_v3  ;;  %v662_v39 = vrot.slane %v661_v60, 2 }
  0xe9   :  { %v935_v30 = vadd.f32 %v934_v53, %v933_v56  ;;  %v998_v20 = vadd.f32 %v997_v27, %v996_v26  ;;  %v1053_v9 = vadd.f32 %v1052_v55, %v1051_v38  ;;  %v867_v51 = vrot.slane %v866_v43, 4 }
  0xea   :  { %v999_v18 = vsel %vm527_vm0, %v4146_v32, 0.0  ;;  %v1054_v46 = vsel %vm527_vm0, %v4148_v22, 0.0  ;;  %v4150_v31 = vunpack.c.l.bf16 %v4149_v50  ;;  %v4151_v25 = vunpack.c.h.bf16 %v4147_v3 }
  0xeb   :  { %v1654_v29 = vunpack.c.l.bf16 %v1788_v13  ;;  %v799_v59 = vadd.f32 %v798_v47, %v797_v41  ;;  %v1000_v48 = vadd.f32 %v999_v18, %v998_v20  ;;  %v1055_v10 = vadd.f32 %v1054_v46, %v1053_v9 }
  0xec   :  { %v1001_v17 = vsel %vm527_vm0, %v4150_v31, 0.0  ;;  %v1056_v58 = vsel %vm527_vm0, %v4151_v25, 0.0  ;;  %v594_v23 = vadd.f32 %v593_v28, %v592_v24  ;;  %v731_v52 = vrot.slane %v730_v11, 2 }
  0xed   :  { %v4152_v19 = vunpack.c.h.bf16 %v4149_v50  ;;  %v4153_v54 = vunpack.c.l.bf16 %v4145_v0  ;;  %v663_v42 = vadd.f32 %v662_v39, %v661_v60  ;;  %v936_v40 = vrot.slane %v935_v30, 4 }
  0xee   :  { %v1002_v7 = vadd.f32 %v1001_v17, %v1000_v48  ;;  %v1057_v36 = vadd.f32 %v1056_v58, %v1055_v10  ;;  %v1655_v5 = vunpack.c.h.bf16 %v1788_v13  ;;  %v868_v41 = vadd.f32 %v867_v51, %v866_v43 }
  0xef   :  { %v1003_v12 = vsel %vm527_vm0, %v4152_v19, 0.0  ;;  %v1058_v2 = vsel %vm527_vm0, %v4153_v54, 0.0  ;;  %v1060_v49 = vsel %vm527_vm0, %v1651_v16, 0.0  ;;  %v800_v61 = vrot.slane %v799_v59, 2 }
  0xf0   :  { %v1004_v14 = vadd.f32 %v1003_v12, %v1002_v7  ;;  %v1059_v21 = vadd.f32 %v1058_v2, %v1057_v36  ;;  %v1658_v24 = vunpack.c.l.bf16 %v1789_v57  ;;  %v595_v63 = vrot.slane %v594_v23, 1  ;;  %v1792_v7 = vld [vmem:[%s3637_s2] ss:$0 sm:$0xff] }
  0xf1   :  { %v732_v45 = vadd.f32 %v731_v52, %v730_v11  ;;  %v1062_v15 = vsel %vm527_vm0, %v1654_v29, 0.0  ;;  %v664_v35 = vrot.slane %v663_v42, 1  ;;  %v937_v44 = vadd.f32 %v936_v40, %v935_v30 }
  0xf2   :  { %v1005_v60 = vrot.slane %v1004_v14, 4  ;;  %v1061_v56 = vadd.f32 %v1060_v49, %v1059_v21  ;;  %v1659_v37 = vunpack.c.h.bf16 %v1789_v57  ;;  %v869_v8 = vrot.slane %v868_v41, 2 }
  0xf3   :  { %v1064_v43 = vsel %vm527_vm0, %v1655_v5, 0.0  ;;  %v801_v34 = vadd.f32 %v800_v61, %v799_v59  ;;  %v1662_v1 = vunpack.c.l.bf16 %v1790_v6  ;;  %v733_v4 = vrot.slane %v732_v45, 1 }
  0xf4   :  { %v1063_v53 = vadd.f32 %v1062_v15, %v1061_v56  ;;  %v1006_v27 = vadd.f32 %v1005_v60, %v1004_v14  ;;  %v1066_v33 = vsel %vm527_vm0, %v1658_v24, 0.0  ;;  %v596_v55 = vadd.f32 %v595_v63, %v594_v23 }
  0xf5   :  { %v665_v0 = vadd.f32 %v664_v35, %v663_v42  ;;  %v938_v16 = vrot.slane %v937_v44, 2  ;;  %v1663_v26 = vunpack.c.h.bf16 %v1790_v6  ;;  %v870_v38 = vadd.f32 %v869_v8, %v868_v41 }
  0xf6   :  { %v1065_v47 = vadd.f32 %v1064_v43, %v1063_v53  ;;  %v1068_v13 = vsel %vm527_vm0, %v1659_v37, 0.0  ;;  %v802_v28 = vrot.slane %v801_v34, 1  ;;  %v734_v32 = vadd.f32 %v733_v4, %v732_v45 }
  0xf7   :  { %v1007_v18 = vrot.slane %v1006_v27, 2  ;;  %v1070_v3 = vsel %vm527_vm0, %v1662_v1, 0.0  ;;  %v939_v22 = vadd.f32 %v938_v16, %v937_v44  ;;  %v1094_v39 = vsel %vm1093_vm2, %v665_v0, %v596_v55 }
  0xf8   :  { %v1067_v11 = vadd.f32 %v1066_v33, %v1065_v47  ;;  %v871_v30 = vrot.slane %v870_v38, 1  ;;  %v1072_v20 = vsel %vm527_vm0, %v1663_v26, 0.0  ;;  %v803_v9 = vadd.f32 %v802_v28, %v801_v34 }
  0xf9   :  { %v1008_v51 = vadd.f32 %v1007_v18, %v1006_v27  ;;  %v1096_v50 = vsel %vm1095_vm3, %v734_v32, %v1094_v39  ;;  %v940_v31 = vrot.slane %v939_v22, 1 }
  0xfa   :  { %v1069_v46 = vadd.f32 %v1068_v13, %v1067_v11  ;;  %v872_v25 = vadd.f32 %v871_v30, %v870_v38  ;;  %v1098_v29 = vsel %vm1097_vm4, %v803_v9, %v1096_v50 }
  0xfb   :  { %v1009_v59 = vrot.slane %v1008_v51, 1  ;;  %v941_v48 = vadd.f32 %v940_v31, %v939_v22 }
  0xfc   :  { %v1071_v62 = vadd.f32 %v1070_v3, %v1069_v46  ;;  %v1100_v23 = vsel %vm1099_vm5, %v872_v25, %v1098_v29 }
  0xfd   :  { %v1010_v19 = vadd.f32 %v1009_v59, %v1008_v51  ;;  %v1102_v54 = vsel %vm1101_vm6, %v941_v48, %v1100_v23 }
  0xfe   :  { %v1073_v17 = vadd.f32 %v1072_v20, %v1071_v62 }
  0xff   :  { %v1104_v57 = vsel %vm1103_vm7, %v1010_v19, %v1102_v54 }
 0x100   :  { %v1074_v58 = vrot.slane %v1073_v17, 4 }
 0x102   :  { %v1075_v10 = vadd.f32 %v1074_v58, %v1073_v17 }
 0x104   :  { %v1076_v52 = vrot.slane %v1075_v10, 2 }
 0x106   :  { %v1077_v12 = vadd.f32 %v1076_v52, %v1075_v10 }
 0x108   :  { %v1078_v2 = vrot.slane %v1077_v12, 1 }
 0x10a   :  { %v1079_v42 = vadd.f32 %v1078_v2, %v1077_v12 }
 0x10c   :  { %v1106_v40 = vsel %vm1105_vm8, %v1079_v42, %v1104_v57 }
 0x10d   :  { %1151 = vmatmul.msk.f32.vlgmr.msra.gmra.mxu0 %vm527_vm0, %v1106_v40 }
 0x18a   :  { %v1130_v36 = vpop.f32.mrf.mxu0 }
 0x18b   :  { %v1131_v5 = vadd.f32 %v1792_v7, %v1130_v36 }
 0x18d   :  { %1133 = vst [vmem:[#allocation2] sm:$0xff] %v1131_v5 }
 0x18e   :  { %1144 = dma.vmem_to_hbm [thread:$0]  %s1140_s28, 128, %s1142_s4, [#allocation3]  }
 0x18f   :  { %1817 = dma.done.wait [#allocation3], 128  }
 0x190   :  { %1818 = vsyncadd [#allocation3], 4294967168 }
 0x191   :  { %1149 = vsyncpa [#allocation3], 1 }

</bundles_post_ra>
